<compile_context>
chip_gen: v5e
topology: v5e:2x2
jax: 0.10.0
libtpu: 0.0.40
codegen_flags: <defaults>
</compile_context>

<pallas_src>
import math

import jax
import jax.numpy as jnp
from jax import lax
from jax.experimental import pallas as pl
from jax.experimental.pallas import tpu as pltpu

# robot_choice is a module-level global in the original code; fix it here.
ROBOT_CHOICE = "7DoF-7R-Panda"

# DH constants (d, a, alpha) per joint for the Panda; theta comes from inputs.
_D  = (0.333, 0.0, 0.316, 0.0, 0.384, 0.0, 0.107)
_A  = (0.0, 0.0, 0.0, 0.0825, -0.0825, 0.0, 0.088)
_AL = (0.0, -math.pi / 2, math.pi / 2, math.pi / 2,
       -math.pi / 2, math.pi / 2, math.pi / 2)
N_DOF = len(_D)

LANE = 128             # batch maps onto the lane axis
SUBLANE = 8            # rows per inner-loop chunk (one f32 vreg per quantity)
ROWS_TILE_MAX = 1024   # max rows per grid step (1024*128 batch elems/tile,
                       # ~10 MiB double-buffered VMEM -> fits default scoped
                       # VMEM on v5e (16 MiB), v6e (32 MiB) and v7x (32 MiB))


def _snap(x):
    """Snap trig constants to exact 0 / +-1 so trace-time folding kicks in."""
    for v in (0.0, 1.0, -1.0):
        if abs(x - v) < 1e-9:
            return v
    return float(x)


_CA = tuple(_snap(math.cos(al)) for al in _AL)
_SA = tuple(_snap(math.sin(al)) for al in _AL)


# ---- trace-time symbolic helpers (fold 0 / +-1 constants; zero runtime cost) -
def _is_c(x):
    return isinstance(x, (int, float))


def _mul(x, y):
    if _is_c(x) and _is_c(y):
        return x * y
    if _is_c(y):
        x, y = y, x
    if _is_c(x):
        if x == 0.0:
            return 0.0
        if x == 1.0:
            return y
        if x == -1.0:
            return -y
        return x * y
    return x * y


def _add(x, y):
    if _is_c(x) and _is_c(y):
        return x + y
    if _is_c(x) and x == 0.0:
        return y
    if _is_c(y) and y == 0.0:
        return x
    return x + y


def _add3(x, y, z):
    return _add(_add(x, y), z)


def _dh_rot_trans(ct, st, j):
    """3x3 rotation + 3-vector translation of the DH matrix A_j."""
    ca, sa, a, d = _CA[j], _SA[j], _A[j], _D[j]
    R = [[ct,  _mul(-ca, st), _mul(sa, st)],
         [st,  _mul(ca, ct),  _mul(-sa, ct)],
         [0.0, sa,            ca]]
    p = [_mul(a, ct), _mul(a, st), d]
    return R, p


def _compose(R, t, Rj, pj):
    """[R,t] <- [R,t] @ [Rj,pj]   (i.e. T_new = T_old @ A_j, affine form)."""
    newR = [[_add3(_mul(R[r][0], Rj[0][c]),
                   _mul(R[r][1], Rj[1][c]),
                   _mul(R[r][2], Rj[2][c])) for c in range(3)]
            for r in range(3)]
    newt = [_add(_add3(_mul(R[r][0], pj[0]),
                       _mul(R[r][1], pj[1]),
                       _mul(R[r][2], pj[2])), t[r]) for r in range(3)]
    return newR, newt


def _as_array(x, shape):
    if _is_c(x):
        return jnp.full(shape, x, jnp.float32)
    return x


# ----------------------------- Pallas kernel ---------------------------------
def _make_fk_loss_kernel(b_valid, rows_tile, need_mask):
    """Build the kernel closure for a static batch size / tile size.

    theta_ref: (N_DOF, rows_tile, 128) f32
    tgt_ref:   (3, rows_tile, 128) f32
    o_ref:     (1, 1, 128) f32 lane-wise partial sums for this tile.
    """
    n_chunks = rows_tile // SUBLANE

    def kernel(theta_ref, tgt_ref, o_ref):
        tile_base = pl.program_id(0) * (rows_tile * LANE)
        if need_mask:
            # Flat index within a chunk: row*128 + lane (constant per chunk).
            idx2d = (lax.broadcasted_iota(jnp.int32, (SUBLANE, LANE), 0) * LANE
                     + lax.broadcasted_iota(jnp.int32, (SUBLANE, LANE), 1))

        def chunk_body(c, acc):
            r0 = pl.multiple_of(c * SUBLANE, SUBLANE)
            sl = pl.ds(r0, SUBLANE)
            # T = A_0, then T <- T @ A_j for j=1..6 (3x3 R / 3-vec t affine
            # chain).  sin/cos are computed lazily per joint to keep the live
            # vreg set small; the scheduler overlaps the EUP trig of joint j
            # with the VALU compose of joint j-1 from dataflow.
            th = theta_ref[0, sl, :]
            R, t = _dh_rot_trans(jnp.cos(th), jnp.sin(th), 0)
            for j in range(1, N_DOF):
                th = theta_ref[j, sl, :]
                Rj, pj = _dh_rot_trans(jnp.cos(th), jnp.sin(th), j)
                R, t = _compose(R, t, Rj, pj)
            shape = (SUBLANE, LANE)
            diff = (jnp.abs(_as_array(t[0], shape) - tgt_ref[0, sl, :])
                    + jnp.abs(_as_array(t[1], shape) - tgt_ref[1, sl, :])
                    + jnp.abs(_as_array(t[2], shape) - tgt_ref[2, sl, :]))
            if need_mask:
                thresh = b_valid - (tile_base + r0 * LANE)
                diff = jnp.where(idx2d < thresh, diff, 0.0)
            return acc + diff

        acc = lax.fori_loop(0, n_chunks, chunk_body,
                            jnp.zeros((SUBLANE, LANE), jnp.float32),
                            unroll=True if n_chunks <= 4 else 2)
        # One sublane reduce per tile; lane reduce + global scale in wrapper.
        o_ref[0] = jnp.sum(acc, axis=0, keepdims=True)

    return kernel


@jax.jit
def fk_loss(inputs, targets):
    """inputs: (B, N_DOF) joint angles, targets: (B, 3) positions -> scalar."""
    inputs = jnp.asarray(inputs, jnp.float32)
    targets = jnp.asarray(targets, jnp.float32)
    B = inputs.shape[0]

    # Pad batch to rows*128 with rows a multiple of SUBLANE.
    rows = max(pl.cdiv(max(B, 1), LANE), 1)
    rows = pl.cdiv(rows, SUBLANE) * SUBLANE
    # Guarantee >= 2 grid tiles whenever there is enough work so the
    # "parallel" grid axis shards across v7x's 2 TensorCores; cap the tile at
    # ROWS_TILE_MAX rows so very large batches stay within scoped VMEM while
    # amortizing the ~0.35us per-grid-step overhead.
    if rows >= 2 * SUBLANE:
        rows_tile = min(pl.cdiv(pl.cdiv(rows, 2), SUBLANE) * SUBLANE,
                        ROWS_TILE_MAX)
    else:
        rows_tile = rows
    rows = pl.cdiv(rows, rows_tile) * rows_tile
    num_tiles = rows // rows_tile
    b_pad = rows * LANE

    # Collapsed prologue: single pad + transpose/reshape per tensor; the
    # (N_DOF, rows, 128) layout keeps per-joint reads lane-dense in-kernel.
    theta_t = jnp.pad(inputs, ((0, b_pad - B), (0, 0))).T.reshape(
        N_DOF, rows, LANE)
    tgt_t = jnp.pad(targets, ((0, b_pad - B), (0, 0))).T.reshape(
        3, rows, LANE)

    kernel = _make_fk_loss_kernel(B, rows_tile, need_mask=(B != b_pad))
    partials = pl.pallas_call(
        kernel,
        out_shape=jax.ShapeDtypeStruct((num_tiles, 1, LANE), jnp.float32),
        grid=(num_tiles,),
        in_specs=[
            pl.BlockSpec((N_DOF, rows_tile, LANE), lambda i: (0, i, 0)),
            pl.BlockSpec((3, rows_tile, LANE), lambda i: (0, i, 0)),
        ],
        out_specs=pl.BlockSpec((1, 1, LANE), lambda i: (i, 0, 0)),
        compiler_params=pltpu.CompilerParams(
            dimension_semantics=("parallel",)),
    )(theta_t, tgt_t)

    # Mean over the GLOBAL (unpadded) batch: B*3 elements.
    return jnp.sum(partials) / (3.0 * max(B, 1))


# ----------------------------- Pure-JAX reference ----------------------------
def fk_loss_ref(inputs, targets):
    """Pure-JAX reference mirroring the PyTorch semantics."""
    def single(th):
        T = jnp.eye(4, dtype=jnp.float32)
        for j in range(N_DOF):
            ct, st = jnp.cos(th[j]), jnp.sin(th[j])
            ca, sa = math.cos(_AL[j]), math.sin(_AL[j])
            a, d = _A[j], _D[j]
            A = jnp.stack([
                jnp.stack([ct, -st * ca, st * sa, a * ct]),
                jnp.stack([st, ct * ca, -ct * sa, a * st]),
                jnp.stack([jnp.float32(0.0), jnp.float32(sa),
                           jnp.float32(ca), jnp.float32(d)]),
                jnp.stack([jnp.float32(0.0), jnp.float32(0.0),
                           jnp.float32(0.0), jnp.float32(1.0)]),
            ])
            T = T @ A
        return T[:3, 3]

    fk = jax.vmap(single)(jnp.asarray(inputs, jnp.float32))
    return jnp.mean(jnp.abs(fk - jnp.asarray(targets, jnp.float32)))


if __name__ == "__main__":
    key = jax.random.PRNGKey(0)
    k1, k2, k3, k4, k5, k6 = jax.random.split(key, 6)

    # Small case (B=8): single tile, lane masking (8 valid of 1024 padded).
    B = 8
    inputs = jax.random.uniform(k1, (B, N_DOF), jnp.float32,
                                minval=-math.pi, maxval=math.pi)
    targets = 0.5 * jax.random.normal(k2, (B, 3), jnp.float32)
    loss = fk_loss(inputs, targets)
    jax.block_until_ready(loss)
    ref = fk_loss_ref(inputs, targets)
    assert jnp.allclose(loss, ref, atol=1e-5, rtol=1e-5), (loss, ref)

    # Medium case: exercises the 2-tile (v7x core-split) path + masking.
    B2 = 1500
    inputs2 = jax.random.uniform(k3, (B2, N_DOF), jnp.float32,
                                 minval=-math.pi, maxval=math.pi)
    targets2 = 0.5 * jax.random.normal(k4, (B2, 3), jnp.float32)
    loss2 = fk_loss(inputs2, targets2)
    jax.block_until_ready(loss2)
    ref2 = fk_loss_ref(inputs2, targets2)
    assert jnp.allclose(loss2, ref2, atol=1e-5, rtol=1e-5), (loss2, ref2)

    # Larger case: exercises the multi-chunk inner loop with unroll=2.
    B3 = 9000
    inputs3 = jax.random.uniform(k5, (B3, N_DOF), jnp.float32,
                                 minval=-math.pi, maxval=math.pi)
    targets3 = 0.5 * jax.random.normal(k6, (B3, 3), jnp.float32)
    loss3 = fk_loss(inputs3, targets3)
    jax.block_until_ready(loss3)
    ref3 = fk_loss_ref(inputs3, targets3)
    assert jnp.allclose(loss3, ref3, atol=1e-5, rtol=1e-5), (loss3, ref3)

    print("KERNEL_OK")
</pallas_src>

<mosaic_0001>
module attributes {stable_mosaic.version = 11 : i64} {
  func.func @kernel(%arg0: i32, %arg1: memref<7x8x128xf32, #tpu.memory_space<vmem>>, %arg2: memref<3x8x128xf32, #tpu.memory_space<vmem>>, %arg3: memref<1x1x128xf32, #tpu.memory_space<vmem>>) attributes {dimension_semantics = [#tpu.dimension_semantics<parallel>], iteration_bounds = array<i64: 1>, scalar_prefetch = 0 : i64, scratch_operands = 0 : i64, tpu.core_type = #tpu.core_type<tc>, window_params = [{transform_indices = @transform_0, window_bounds = array<i64: 7, 8, 128>}, {transform_indices = @transform_1, window_bounds = array<i64: 3, 8, 128>}, {transform_indices = @transform_2, window_bounds = array<i64: 1, 1, 128>}]} {
    %c1024_i32 = arith.constant 1024 : i32
    %0 = arith.muli %arg0, %c1024_i32 : i32
    %1 = tpu.iota {dimensions = array<i32: 0>} : vector<8x128xi32>
    %c128_i32 = arith.constant 128 : i32
    %2 = vector.broadcast %c128_i32 : i32 to vector<8x128xi32>
    %3 = arith.muli %1, %2 : vector<8x128xi32>
    %4 = tpu.iota {dimensions = array<i32: 1>} : vector<8x128xi32>
    %5 = arith.addi %3, %4 : vector<8x128xi32>
    %cst = arith.constant 0.000000e+00 : f32
    %6 = vector.broadcast %cst : f32 to vector<8x128xf32>
    %c0_i32 = arith.constant 0 : i32
    %c8_i32 = arith.constant 8 : i32
    %7 = arith.muli %c0_i32, %c8_i32 : i32
    %8 = tpu.assume_multiple %7, 8 : i32
    %c0 = arith.constant 0 : index
    %9 = arith.index_cast %8 : i32 to index
    %c0_0 = arith.constant 0 : index
    %10 = vector.load %arg1[%c0, %9, %c0_0] : memref<7x8x128xf32, #tpu.memory_space<vmem>>, vector<1x8x128xf32>
    %11 = vector.shape_cast %10 : vector<1x8x128xf32> to vector<8x128xf32>
    %12 = math.cos %11 : vector<8x128xf32>
    %13 = math.sin %11 : vector<8x128xf32>
    %cst_1 = arith.constant 0.000000e+00 : f32
    %14 = vector.broadcast %cst_1 : f32 to vector<8x128xf32>
    %15 = arith.subf %14, %13 : vector<8x128xf32>
    %c1 = arith.constant 1 : index
    %16 = arith.index_cast %8 : i32 to index
    %c0_2 = arith.constant 0 : index
    %17 = vector.load %arg1[%c1, %16, %c0_2] : memref<7x8x128xf32, #tpu.memory_space<vmem>>, vector<1x8x128xf32>
    %18 = vector.shape_cast %17 : vector<1x8x128xf32> to vector<8x128xf32>
    %19 = math.cos %18 : vector<8x128xf32>
    %20 = math.sin %18 : vector<8x128xf32>
    %cst_3 = arith.constant 0.000000e+00 : f32
    %21 = vector.broadcast %cst_3 : f32 to vector<8x128xf32>
    %22 = arith.subf %21, %20 : vector<8x128xf32>
    %23 = arith.mulf %12, %19 : vector<8x128xf32>
    %24 = arith.mulf %15, %20 : vector<8x128xf32>
    %25 = arith.addf %23, %24 : vector<8x128xf32>
    %26 = arith.mulf %12, %22 : vector<8x128xf32>
    %27 = arith.mulf %15, %19 : vector<8x128xf32>
    %28 = arith.addf %26, %27 : vector<8x128xf32>
    %29 = arith.mulf %13, %19 : vector<8x128xf32>
    %30 = arith.mulf %12, %20 : vector<8x128xf32>
    %31 = arith.addf %29, %30 : vector<8x128xf32>
    %32 = arith.mulf %13, %22 : vector<8x128xf32>
    %33 = arith.mulf %12, %19 : vector<8x128xf32>
    %34 = arith.addf %32, %33 : vector<8x128xf32>
    %c2 = arith.constant 2 : index
    %35 = arith.index_cast %8 : i32 to index
    %c0_4 = arith.constant 0 : index
    %36 = vector.load %arg1[%c2, %35, %c0_4] : memref<7x8x128xf32, #tpu.memory_space<vmem>>, vector<1x8x128xf32>
    %37 = vector.shape_cast %36 : vector<1x8x128xf32> to vector<8x128xf32>
    %38 = math.cos %37 : vector<8x128xf32>
    %39 = math.sin %37 : vector<8x128xf32>
    %cst_5 = arith.constant 0.000000e+00 : f32
    %40 = vector.broadcast %cst_5 : f32 to vector<8x128xf32>
    %41 = arith.subf %40, %38 : vector<8x128xf32>
    %42 = arith.mulf %25, %38 : vector<8x128xf32>
    %43 = arith.mulf %25, %39 : vector<8x128xf32>
    %44 = arith.mulf %31, %38 : vector<8x128xf32>
    %45 = arith.mulf %31, %39 : vector<8x128xf32>
    %cst_6 = arith.constant 0.000000e+00 : f32
    %46 = vector.broadcast %cst_6 : f32 to vector<8x128xf32>
    %47 = arith.subf %46, %39 : vector<8x128xf32>
    %cst_7 = arith.constant 0.000000e+00 : f32
    %48 = vector.broadcast %cst_7 : f32 to vector<8x128xf32>
    %49 = arith.subf %48, %41 : vector<8x128xf32>
    %cst_8 = arith.constant 3.160000e-01 : f32
    %50 = vector.broadcast %cst_8 : f32 to vector<8x128xf32>
    %51 = arith.mulf %50, %28 : vector<8x128xf32>
    %cst_9 = arith.constant 3.160000e-01 : f32
    %52 = vector.broadcast %cst_9 : f32 to vector<8x128xf32>
    %53 = arith.mulf %52, %34 : vector<8x128xf32>
    %c3 = arith.constant 3 : index
    %54 = arith.index_cast %8 : i32 to index
    %c0_10 = arith.constant 0 : index
    %55 = vector.load %arg1[%c3, %54, %c0_10] : memref<7x8x128xf32, #tpu.memory_space<vmem>>, vector<1x8x128xf32>
    %56 = vector.shape_cast %55 : vector<1x8x128xf32> to vector<8x128xf32>
    %57 = math.cos %56 : vector<8x128xf32>
    %58 = math.sin %56 : vector<8x128xf32>
    %cst_11 = arith.constant 0.000000e+00 : f32
    %59 = vector.broadcast %cst_11 : f32 to vector<8x128xf32>
    %60 = arith.subf %59, %57 : vector<8x128xf32>
    %cst_12 = arith.constant 8.250000e-02 : f32
    %61 = vector.broadcast %cst_12 : f32 to vector<8x128xf32>
    %62 = arith.mulf %61, %57 : vector<8x128xf32>
    %cst_13 = arith.constant 8.250000e-02 : f32
    %63 = vector.broadcast %cst_13 : f32 to vector<8x128xf32>
    %64 = arith.mulf %63, %58 : vector<8x128xf32>
    %65 = arith.mulf %42, %57 : vector<8x128xf32>
    %66 = arith.mulf %28, %58 : vector<8x128xf32>
    %67 = arith.addf %65, %66 : vector<8x128xf32>
    %68 = arith.mulf %42, %58 : vector<8x128xf32>
    %69 = arith.mulf %28, %60 : vector<8x128xf32>
    %70 = arith.addf %68, %69 : vector<8x128xf32>
    %71 = arith.mulf %44, %57 : vector<8x128xf32>
    %72 = arith.mulf %34, %58 : vector<8x128xf32>
    %73 = arith.addf %71, %72 : vector<8x128xf32>
    %74 = arith.mulf %44, %58 : vector<8x128xf32>
    %75 = arith.mulf %34, %60 : vector<8x128xf32>
    %76 = arith.addf %74, %75 : vector<8x128xf32>
    %77 = arith.mulf %47, %57 : vector<8x128xf32>
    %78 = arith.mulf %47, %58 : vector<8x128xf32>
    %79 = arith.mulf %42, %62 : vector<8x128xf32>
    %80 = arith.mulf %28, %64 : vector<8x128xf32>
    %81 = arith.addf %79, %80 : vector<8x128xf32>
    %82 = arith.addf %81, %51 : vector<8x128xf32>
    %83 = arith.mulf %44, %62 : vector<8x128xf32>
    %84 = arith.mulf %34, %64 : vector<8x128xf32>
    %85 = arith.addf %83, %84 : vector<8x128xf32>
    %86 = arith.addf %85, %53 : vector<8x128xf32>
    %87 = arith.mulf %47, %62 : vector<8x128xf32>
    %cst_14 = arith.constant 3.330000e-01 : f32
    %88 = vector.broadcast %cst_14 : f32 to vector<8x128xf32>
    %89 = arith.addf %87, %88 : vector<8x128xf32>
    %c4 = arith.constant 4 : index
    %90 = arith.index_cast %8 : i32 to index
    %c0_15 = arith.constant 0 : index
    %91 = vector.load %arg1[%c4, %90, %c0_15] : memref<7x8x128xf32, #tpu.memory_space<vmem>>, vector<1x8x128xf32>
    %92 = vector.shape_cast %91 : vector<1x8x128xf32> to vector<8x128xf32>
    %93 = math.cos %92 : vector<8x128xf32>
    %94 = math.sin %92 : vector<8x128xf32>
    %cst_16 = arith.constant 0.000000e+00 : f32
    %95 = vector.broadcast %cst_16 : f32 to vector<8x128xf32>
    %96 = arith.subf %95, %94 : vector<8x128xf32>
    %cst_17 = arith.constant -8.250000e-02 : f32
    %97 = vector.broadcast %cst_17 : f32 to vector<8x128xf32>
    %98 = arith.mulf %97, %93 : vector<8x128xf32>
    %cst_18 = arith.constant -8.250000e-02 : f32
    %99 = vector.broadcast %cst_18 : f32 to vector<8x128xf32>
    %100 = arith.mulf %99, %94 : vector<8x128xf32>
    %101 = arith.mulf %67, %93 : vector<8x128xf32>
    %102 = arith.mulf %43, %94 : vector<8x128xf32>
    %103 = arith.addf %101, %102 : vector<8x128xf32>
    %cst_19 = arith.constant 0.000000e+00 : f32
    %104 = vector.broadcast %cst_19 : f32 to vector<8x128xf32>
    %105 = arith.subf %104, %70 : vector<8x128xf32>
    %106 = arith.mulf %67, %96 : vector<8x128xf32>
    %107 = arith.mulf %43, %93 : vector<8x128xf32>
    %108 = arith.addf %106, %107 : vector<8x128xf32>
    %109 = arith.mulf %73, %93 : vector<8x128xf32>
    %110 = arith.mulf %45, %94 : vector<8x128xf32>
    %111 = arith.addf %109, %110 : vector<8x128xf32>
    %cst_20 = arith.constant 0.000000e+00 : f32
    %112 = vector.broadcast %cst_20 : f32 to vector<8x128xf32>
    %113 = arith.subf %112, %76 : vector<8x128xf32>
    %114 = arith.mulf %73, %96 : vector<8x128xf32>
    %115 = arith.mulf %45, %93 : vector<8x128xf32>
    %116 = arith.addf %114, %115 : vector<8x128xf32>
    %117 = arith.mulf %77, %93 : vector<8x128xf32>
    %118 = arith.mulf %49, %94 : vector<8x128xf32>
    %119 = arith.addf %117, %118 : vector<8x128xf32>
    %cst_21 = arith.constant 0.000000e+00 : f32
    %120 = vector.broadcast %cst_21 : f32 to vector<8x128xf32>
    %121 = arith.subf %120, %78 : vector<8x128xf32>
    %122 = arith.mulf %77, %96 : vector<8x128xf32>
    %123 = arith.mulf %49, %93 : vector<8x128xf32>
    %124 = arith.addf %122, %123 : vector<8x128xf32>
    %125 = arith.mulf %67, %98 : vector<8x128xf32>
    %126 = arith.mulf %43, %100 : vector<8x128xf32>
    %cst_22 = arith.constant 3.840000e-01 : f32
    %127 = vector.broadcast %cst_22 : f32 to vector<8x128xf32>
    %128 = arith.mulf %127, %70 : vector<8x128xf32>
    %129 = arith.addf %125, %126 : vector<8x128xf32>
    %130 = arith.addf %129, %128 : vector<8x128xf32>
    %131 = arith.addf %130, %82 : vector<8x128xf32>
    %132 = arith.mulf %73, %98 : vector<8x128xf32>
    %133 = arith.mulf %45, %100 : vector<8x128xf32>
    %cst_23 = arith.constant 3.840000e-01 : f32
    %134 = vector.broadcast %cst_23 : f32 to vector<8x128xf32>
    %135 = arith.mulf %134, %76 : vector<8x128xf32>
    %136 = arith.addf %132, %133 : vector<8x128xf32>
    %137 = arith.addf %136, %135 : vector<8x128xf32>
    %138 = arith.addf %137, %86 : vector<8x128xf32>
    %139 = arith.mulf %77, %98 : vector<8x128xf32>
    %140 = arith.mulf %49, %100 : vector<8x128xf32>
    %cst_24 = arith.constant 3.840000e-01 : f32
    %141 = vector.broadcast %cst_24 : f32 to vector<8x128xf32>
    %142 = arith.mulf %141, %78 : vector<8x128xf32>
    %143 = arith.addf %139, %140 : vector<8x128xf32>
    %144 = arith.addf %143, %142 : vector<8x128xf32>
    %145 = arith.addf %144, %89 : vector<8x128xf32>
    %c5 = arith.constant 5 : index
    %146 = arith.index_cast %8 : i32 to index
    %c0_25 = arith.constant 0 : index
    %147 = vector.load %arg1[%c5, %146, %c0_25] : memref<7x8x128xf32, #tpu.memory_space<vmem>>, vector<1x8x128xf32>
    %148 = vector.shape_cast %147 : vector<1x8x128xf32> to vector<8x128xf32>
    %149 = math.cos %148 : vector<8x128xf32>
    %150 = math.sin %148 : vector<8x128xf32>
    %cst_26 = arith.constant 0.000000e+00 : f32
    %151 = vector.broadcast %cst_26 : f32 to vector<8x128xf32>
    %152 = arith.subf %151, %149 : vector<8x128xf32>
    %153 = arith.mulf %103, %149 : vector<8x128xf32>
    %154 = arith.mulf %105, %150 : vector<8x128xf32>
    %155 = arith.addf %153, %154 : vector<8x128xf32>
    %156 = arith.mulf %103, %150 : vector<8x128xf32>
    %157 = arith.mulf %105, %152 : vector<8x128xf32>
    %158 = arith.addf %156, %157 : vector<8x128xf32>
    %159 = arith.mulf %111, %149 : vector<8x128xf32>
    %160 = arith.mulf %113, %150 : vector<8x128xf32>
    %161 = arith.addf %159, %160 : vector<8x128xf32>
    %162 = arith.mulf %111, %150 : vector<8x128xf32>
    %163 = arith.mulf %113, %152 : vector<8x128xf32>
    %164 = arith.addf %162, %163 : vector<8x128xf32>
    %165 = arith.mulf %119, %149 : vector<8x128xf32>
    %166 = arith.mulf %121, %150 : vector<8x128xf32>
    %167 = arith.addf %165, %166 : vector<8x128xf32>
    %168 = arith.mulf %119, %150 : vector<8x128xf32>
    %169 = arith.mulf %121, %152 : vector<8x128xf32>
    %170 = arith.addf %168, %169 : vector<8x128xf32>
    %c6 = arith.constant 6 : index
    %171 = arith.index_cast %8 : i32 to index
    %c0_27 = arith.constant 0 : index
    %172 = vector.load %arg1[%c6, %171, %c0_27] : memref<7x8x128xf32, #tpu.memory_space<vmem>>, vector<1x8x128xf32>
    %173 = vector.shape_cast %172 : vector<1x8x128xf32> to vector<8x128xf32>
    %174 = math.cos %173 : vector<8x128xf32>
    %175 = math.sin %173 : vector<8x128xf32>
    %cst_28 = arith.constant 0.0879999995 : f32
    %176 = vector.broadcast %cst_28 : f32 to vector<8x128xf32>
    %177 = arith.mulf %176, %174 : vector<8x128xf32>
    %cst_29 = arith.constant 0.0879999995 : f32
    %178 = vector.broadcast %cst_29 : f32 to vector<8x128xf32>
    %179 = arith.mulf %178, %175 : vector<8x128xf32>
    %180 = arith.mulf %155, %177 : vector<8x128xf32>
    %181 = arith.mulf %108, %179 : vector<8x128xf32>
    %cst_30 = arith.constant 1.070000e-01 : f32
    %182 = vector.broadcast %cst_30 : f32 to vector<8x128xf32>
    %183 = arith.mulf %182, %158 : vector<8x128xf32>
    %184 = arith.addf %180, %181 : vector<8x128xf32>
    %185 = arith.addf %184, %183 : vector<8x128xf32>
    %186 = arith.addf %185, %131 : vector<8x128xf32>
    %187 = arith.mulf %161, %177 : vector<8x128xf32>
    %188 = arith.mulf %116, %179 : vector<8x128xf32>
    %cst_31 = arith.constant 1.070000e-01 : f32
    %189 = vector.broadcast %cst_31 : f32 to vector<8x128xf32>
    %190 = arith.mulf %189, %164 : vector<8x128xf32>
    %191 = arith.addf %187, %188 : vector<8x128xf32>
    %192 = arith.addf %191, %190 : vector<8x128xf32>
    %193 = arith.addf %192, %138 : vector<8x128xf32>
    %194 = arith.mulf %167, %177 : vector<8x128xf32>
    %195 = arith.mulf %124, %179 : vector<8x128xf32>
    %cst_32 = arith.constant 1.070000e-01 : f32
    %196 = vector.broadcast %cst_32 : f32 to vector<8x128xf32>
    %197 = arith.mulf %196, %170 : vector<8x128xf32>
    %198 = arith.addf %194, %195 : vector<8x128xf32>
    %199 = arith.addf %198, %197 : vector<8x128xf32>
    %200 = arith.addf %199, %145 : vector<8x128xf32>
    %c0_33 = arith.constant 0 : index
    %201 = arith.index_cast %8 : i32 to index
    %c0_34 = arith.constant 0 : index
    %202 = vector.load %arg2[%c0_33, %201, %c0_34] : memref<3x8x128xf32, #tpu.memory_space<vmem>>, vector<1x8x128xf32>
    %203 = vector.shape_cast %202 : vector<1x8x128xf32> to vector<8x128xf32>
    %204 = arith.subf %186, %203 : vector<8x128xf32>
    %205 = math.absf %204 : vector<8x128xf32>
    %c1_35 = arith.constant 1 : index
    %206 = arith.index_cast %8 : i32 to index
    %c0_36 = arith.constant 0 : index
    %207 = vector.load %arg2[%c1_35, %206, %c0_36] : memref<3x8x128xf32, #tpu.memory_space<vmem>>, vector<1x8x128xf32>
    %208 = vector.shape_cast %207 : vector<1x8x128xf32> to vector<8x128xf32>
    %209 = arith.subf %193, %208 : vector<8x128xf32>
    %210 = math.absf %209 : vector<8x128xf32>
    %211 = arith.addf %205, %210 : vector<8x128xf32>
    %c2_37 = arith.constant 2 : index
    %212 = arith.index_cast %8 : i32 to index
    %c0_38 = arith.constant 0 : index
    %213 = vector.load %arg2[%c2_37, %212, %c0_38] : memref<3x8x128xf32, #tpu.memory_space<vmem>>, vector<1x8x128xf32>
    %214 = vector.shape_cast %213 : vector<1x8x128xf32> to vector<8x128xf32>
    %215 = arith.subf %200, %214 : vector<8x128xf32>
    %216 = math.absf %215 : vector<8x128xf32>
    %217 = arith.addf %211, %216 : vector<8x128xf32>
    %c128_i32_39 = arith.constant 128 : i32
    %218 = arith.muli %8, %c128_i32_39 : i32
    %219 = arith.addi %0, %218 : i32
    %c8_i32_40 = arith.constant 8 : i32
    %220 = arith.subi %c8_i32_40, %219 : i32
    %221 = vector.broadcast %220 : i32 to vector<8x128xi32>
    %222 = arith.cmpi slt, %5, %221 : vector<8x128xi32>
    %cst_41 = arith.constant 0.000000e+00 : f32
    %223 = vector.broadcast %cst_41 : f32 to vector<8x128xf32>
    %224 = arith.select %222, %217, %223 : vector<8x128xi1>, vector<8x128xf32>
    %225 = arith.addf %6, %224 : vector<8x128xf32>
    %c1_i32 = arith.constant 1 : i32
    %cst_42 = arith.constant dense<0.000000e+00> : vector<128xf32>
    %226 = vector.multi_reduction <add>, %225, %cst_42 [0] : vector<8x128xf32> to vector<128xf32>
    %227 = vector.shape_cast %226 : vector<128xf32> to vector<1x128xf32>
    %c0_43 = arith.constant 0 : index
    %c0_44 = arith.constant 0 : index
    %c0_45 = arith.constant 0 : index
    %228 = vector.load %arg3[%c0_43, %c0_44, %c0_45] : memref<1x1x128xf32, #tpu.memory_space<vmem>>, vector<1x1x128xf32>
    %229 = vector.shape_cast %228 : vector<1x1x128xf32> to vector<1x128xf32>
    %230 = vector.shape_cast %227 : vector<1x128xf32> to vector<1x1x128xf32>
    tpu.vector_store %arg3[%c0_43, %c0_44, %c0_45], %230 {strides = array<i32>} : memref<1x1x128xf32, #tpu.memory_space<vmem>>, vector<1x1x128xf32>,
    return
  }
  func.func @transform_0(%arg0: i32) -> (i32, i32, i32) {
    %c0_i32 = arith.constant 0 : i32
    %c0_i32_0 = arith.constant 0 : i32
    %c0_i32_1 = arith.constant 0 : i32
    return %c0_i32, %arg0, %c0_i32_0 : i32, i32, i32
  }
  func.func @transform_1(%arg0: i32) -> (i32, i32, i32) {
    %c0_i32 = arith.constant 0 : i32
    %c0_i32_0 = arith.constant 0 : i32
    %c0_i32_1 = arith.constant 0 : i32
    return %c0_i32, %arg0, %c0_i32_0 : i32, i32, i32
  }
  func.func @transform_2(%arg0: i32) -> (i32, i32, i32) {
    %c0_i32 = arith.constant 0 : i32
    %c0_i32_0 = arith.constant 0 : i32
    %c0_i32_1 = arith.constant 0 : i32
    return %arg0, %c0_i32, %c0_i32_0 : i32, i32, i32
  }
}

</mosaic_0001>

<bundles_post_ra>
// kernel: fk_loss.1
= control target key start
LH: loop header
LB: loop body
LE: loop exit
PB: predicated region body
PF: predicated region fallthrough
CT: control target
= control target key end

     0   :  { %v2433_v15 = vmov 683565275   ;;  %v3775_v17 = vmov 2475754826   ;;  %v3773_v19 = vmov 2131351028   ;;  %s3765_s0 = inlined_call_operand.vmem [shape: f32[7,8,128], index: 0, kind: input, shape index: {}]   ;;  %s3766_s1 = inlined_call_operand.vmem [shape: f32[3,8,128], index: 1, kind: input, shape index: {}]   ;;  %s3767_s2 = inlined_call_operand.vmem [shape: f32[1,1,128], index: 2, kind: output, shape index: {}]  }
   0x1   :  { %v2458_v0 = vld [vmem:[%s3765_s0] sm:$0xff]  ;;  %v2464_v2 = vld [vmem:[%s3765_s0 + $0x8] sm:$0xff]  ;;  %v3771_v22 = vmov 2102212464   ;;  %v3778_v24 = vmov 920167782  }
   0x2   :  { %v22_v1 = vand.u32 2139095040, %v2458_v0  ;;  %v335_v4 = vand.u32 2139095040, %v2464_v2  ;;  %v19_v6 = vand.u32 2147483647, %v2458_v0  ;;  %v3777_v30 = vmov 1326507024  }
   0x4   :  { %v23_v3 = vshrl.u32 %v22_v1, 23  ;;  %v336_v8 = vshrl.u32 %v335_v4, 23  ;;  %v26_v9 = vand.u32 8388607, %v19_v6  ;;  %v332_v1 = vand.u32 2147483647, %v2464_v2 }
   0x6   :  { %v2369_v5 = vadd.s32 4294967169, %v23_v3  ;;  %v2376_v13 = vadd.s32 4294967169, %v336_v8  ;;  %v27_v21 = vor.u32 8388608, %v26_v9 }
   0x8   :  { %v29_v7 = vadd.s32 1, %v2369_v5  ;;  %v342_v32 = vadd.s32 1, %v2376_v13  ;;  %v2498_v38 = vshll.u32 %v27_v21, 8 }
   0xa   :  { %vm30_vm0 = vcmp.gt.s32.totalorder %v29_v7, 0  ;;  %vm343_vm5 = vcmp.gt.s32.totalorder %v342_v32, 0  ;;  %v68_v47 = vand.u32 65535, %v2498_v38  ;;  %v69_v51 = vshrl.u32 %v2498_v38, 16 }
   0xb   :  { %v31_v10 = vsel %vm30_vm0, %v29_v7, 0  ;;  %v344_v50 = vsel %vm343_vm5, %v342_v32, 0 }
   0xc   :  { %v33_v11 = vand.u32 31, %v31_v10  ;;  %v2470_v12 = vshrl.u32 %v31_v10, 5  ;;  %v346_v55 = vand.u32 31, %v344_v50  ;;  %v2539_v5 = vshrl.u32 %v344_v50, 5 }
   0xe   :  { %v2472_v14 = vsub.s32 32, %v33_v11  ;;  %v36_v16 = vshll.u32 %v2433_v15, %v33_v11  ;;  %v39_v18 = vshll.u32 %v3775_v17, %v33_v11  ;;  %v42_v20 = vshll.u32 %v3773_v19, %v33_v11 }
   0xf   :  { %v45_v23 = vshll.u32 %v3771_v22, %v33_v11  ;;  %v48_v25 = vshll.u32 %v3778_v24, %v33_v11  ;;  %vm51_vm1 = vcmp.lt.s32.totalorder %v2470_v12, 1  ;;  %vm54_vm2 = vcmp.lt.s32.totalorder %v2470_v12, 4 }
  0x10   :  { %v37_v26 = vshrl.u32 %v3775_v17, %v2472_v14  ;;  %v40_v27 = vshrl.u32 %v3773_v19, %v2472_v14  ;;  %v43_v28 = vshrl.u32 %v3771_v22, %v2472_v14  ;;  %v46_v29 = vshrl.u32 %v3778_v24, %v2472_v14 }
  0x11   :  { %v49_v31 = vshrl.u32 %v3777_v30, %v2472_v14  ;;  %vm53_vm3 = vcmp.lt.s32.totalorder %v2470_v12, 3  ;;  %vm52_vm4 = vcmp.lt.s32.totalorder %v2470_v12, 2  ;;  %v2533_v61 = vsub.s32 32, %v346_v55 }
  0x12   :  { %v2490_v33 = vor.u32 %v37_v26, %v36_v16  ;;  %v2492_v34 = vor.u32 %v40_v27, %v39_v18  ;;  %v2494_v35 = vor.u32 %v43_v28, %v42_v20  ;;  %v47_v36 = vor.u32 %v46_v29, %v45_v23 }
  0x13   :  { %v50_v37 = vor.u32 %v49_v31, %v48_v25  ;;  %v349_v7 = vshll.u32 %v2433_v15, %v346_v55  ;;  %v358_v9 = vshll.u32 %v3771_v22, %v346_v55  ;;  %v359_v10 = vshrl.u32 %v3778_v24, %v2533_v61 }
  0x14   :  { %v59_v39 = vsel %vm51_vm1, %v2490_v33, %v2492_v34  ;;  %v63_v40 = vsel %vm51_vm1, %v2492_v34, %v2494_v35  ;;  %v60_v41 = vsel %vm54_vm2, %v47_v36, 920167782  ;;  %v361_v13 = vshll.u32 %v3778_v24, %v346_v55 }
  0x15   :  { %v64_v42 = vsel %vm54_vm2, %v50_v37, 1326507024  ;;  %v61_v43 = vsel %vm53_vm3, %v2494_v35, %v60_v41  ;;  %v362_v16 = vshrl.u32 %v3777_v30, %v2533_v61  ;;  %v350_v20 = vshrl.u32 %v3775_v17, %v2533_v61 }
  0x16   :  { %v65_v44 = vsel %vm53_vm3, %v47_v36, %v64_v42  ;;  %v62_v45 = vsel %vm52_vm4, %v59_v39, %v61_v43  ;;  %v352_v21 = vshll.u32 %v3775_v17, %v346_v55  ;;  %v353_v23 = vshrl.u32 %v3773_v19, %v2533_v61 }
  0x17   :  { %v66_v46 = vsel %vm52_vm4, %v63_v40, %v65_v44  ;;  %v93_v49 = vshrl.u32 %v62_v45, 16  ;;  %v92_v53 = vand.u32 65535, %v62_v45  ;;  %v2439_v26 = vmov 0  }
  0x18   :  { %v71_v48 = vshrl.u32 %v66_v46, 16  ;;  %v70_v52 = vand.u32 65535, %v66_v46  ;;  %v355_v28 = vshll.u32 %v3773_v19, %v346_v55  ;;  %v356_v29 = vshrl.u32 %v3771_v22, %v2533_v61 }
  0x19   :  { %v2524_v54 = vmul.u32 %v93_v49, %v68_v47  ;;  %v2530_v58 = vmul.u32 %v92_v53, %v69_v51  ;;  %v94_v59 = vmul.u32 %v92_v53, %v68_v47  ;;  %v97_v18 = vmul.u32 %v93_v49, %v69_v51  ;;  %v2583_v49 = vld [vmem:[%s3765_s0 + $0x10] sm:$0xff] }
  0x1a   :  { %v2526_v56 = vmul.u32 %v71_v48, %v68_v47  ;;  %v2528_v57 = vmul.u32 %v70_v52, %v69_v51  ;;  %v72_v62 = vmul.u32 %v70_v52, %v68_v47  ;;  %v75_v25 = vmul.u32 %v71_v48, %v69_v51 }
  0x1b   :  { %v98_v60 = vshll.u32 %v2524_v54, 16  ;;  %v100_v4 = vshll.u32 %v2530_v58, 16  ;;  %v360_v32 = vor.u32 %v359_v10, %v358_v9  ;;  %v339_v36 = vand.u32 8388607, %v332_v1 }
  0x1c   :  { %v76_v63 = vshll.u32 %v2526_v56, 16  ;;  %v78_v3 = vshll.u32 %v2528_v57, 16  ;;  %v363_v37 = vor.u32 %v362_v16, %v361_v13  ;;  %vm367_vm10 = vcmp.lt.s32.totalorder %v2539_v5, 4 }
  0x1d   :  { %vm102_vm6 = vc.u32 %v94_v59, %v98_v60  ;;  %v2542_v8 = vadd.s32 %v98_v60, %v94_v59  ;;  %v2566_v40 = vor.u32 %v350_v20, %v349_v7  ;;  %v2569_v43 = vor.u32 %v353_v23, %v352_v21 }
  0x1e   :  { %vm80_vm7 = vc.u32 %v72_v62, %v76_v63  ;;  %v82_v11 = vadd.s32 %v76_v63, %v72_v62  ;;  %v103_v27 = vsel %vm102_vm6, 1, %v2439_v26  ;;  %v2571_v44 = vor.u32 %v356_v29, %v355_v28 }
  0x1f   :  { %v81_v31 = vsel %vm80_vm7, 1, %v2439_v26  ;;  %vm106_vm8 = vc.u32 %v2542_v8, %v100_v4  ;;  %v105_v39 = vadd.s32 %v103_v27, %v97_v18  ;;  %vm364_vm11 = vcmp.lt.s32.totalorder %v2539_v5, 1 }
  0x20   :  { %vm84_vm9 = vc.u32 %v82_v11, %v78_v3  ;;  %v83_v41 = vadd.s32 %v81_v31, %v75_v25  ;;  %v107_v42 = vsel %vm106_vm8, 1, %v2439_v26  ;;  %vm366_vm12 = vcmp.lt.s32.totalorder %v2539_v5, 3 }
  0x21   :  { %v85_v45 = vsel %vm84_vm9, 1, %v2439_v26  ;;  %v373_v46 = vsel %vm367_vm10, %v360_v32, 920167782  ;;  %v340_v47 = vor.u32 8388608, %v339_v36  ;;  %v377_v48 = vsel %vm367_vm10, %v363_v37, 1326507024 }
  0x22   :  { %v77_v50 = vshrl.u32 %v2526_v56, 16  ;;  %v99_v51 = vshrl.u32 %v2524_v54, 16  ;;  %v109_v52 = vadd.s32 %v107_v42, %v105_v39  ;;  %v87_v53 = vadd.s32 %v85_v45, %v83_v41 }
  0x23   :  { %vm365_vm13 = vcmp.lt.s32.totalorder %v2539_v5, 2  ;;  %v372_v55 = vsel %vm364_vm11, %v2566_v40, %v2569_v43  ;;  %v374_v59 = vsel %vm366_vm12, %v2571_v44, %v373_v46  ;;  %v376_v56 = vsel %vm364_vm11, %v2569_v43, %v2571_v44 }
  0x24   :  { %v378_v54 = vsel %vm366_vm12, %v360_v32, %v377_v48  ;;  %v659_v60 = vand.u32 2139095040, %v2583_v49  ;;  %v2602_v62 = vshll.u32 %v340_v47, 8  ;;  %v101_v63 = vshrl.u32 %v2530_v58, 16 }
  0x25   :  { %v110_v3 = vadd.s32 %v109_v52, %v99_v51  ;;  %v375_v7 = vsel %vm365_vm13, %v372_v55, %v374_v59  ;;  %v35_v9 = vshrl.u32 %v2433_v15, %v2472_v14  ;;  %v79_v10 = vshrl.u32 %v2528_v57, 16 }
  0x26   :  { %v88_v11 = vadd.s32 %v87_v53, %v77_v50  ;;  %v379_v13 = vsel %vm365_vm13, %v376_v56, %v378_v54  ;;  %v56_v16 = vsel %vm54_vm2, %v2494_v35, 2102212464  ;;  %v660_v18 = vshrl.u32 %v659_v60, 23 }
  0x27   :  { %v381_v20 = vand.u32 65535, %v2602_v62  ;;  %v406_v21 = vshrl.u32 %v375_v7, 16  ;;  %v111_v23 = vadd.s32 %v110_v3, %v101_v63  ;;  %v384_v25 = vshrl.u32 %v379_v13, 16 }
  0x28   :  { %v55_v14 = vsel %vm51_vm1, %v35_v9, %v2490_v33  ;;  %v57_v57 = vsel %vm53_vm3, %v2492_v34, %v56_v16  ;;  %v2622_v27 = vadd.s32 %v88_v11, %v79_v10  ;;  %v2627_v35 = vadd.s32 %v2542_v8, %v100_v4 }
  0x29   :  { %v2383_v28 = vadd.s32 4294967169, %v660_v18  ;;  %v382_v29 = vshrl.u32 %v2602_v62, 16  ;;  %v405_v31 = vand.u32 65535, %v375_v7  ;;  %v408_v32 = vmul.u32 %v406_v21, %v381_v20 }
  0x2a   :  { %v58_v36 = vsel %vm52_vm4, %v55_v14, %v57_v57  ;;  %v115_v33 = vadd.s32 1, %v111_v23  ;;  %v383_v37 = vand.u32 65535, %v379_v13  ;;  %v386_v39 = vmul.u32 %v384_v25, %v381_v20 }
  0x2b   :  { %vm114_vm14 = vc.u32 %v2622_v27, %v2627_v35  ;;  %v666_v34 = vadd.s32 1, %v2383_v28  ;;  %v112_v58 = vmul.u32 %v2498_v38, %v58_v36  ;;  %v407_v41 = vmul.u32 %v405_v31, %v381_v20 }
  0x2c   :  { %v409_v4 = vmul.u32 %v405_v31, %v382_v29  ;;  %v411_v8 = vshll.u32 %v408_v32, 16  ;;  %v116_v42 = vsel %vm114_vm14, %v115_v33, %v111_v23  ;;  %v385_v45 = vmul.u32 %v383_v37, %v381_v20 }
  0x2d   :  { %v387_v46 = vmul.u32 %v383_v37, %v382_v29  ;;  %v389_v47 = vshll.u32 %v386_v39, 16  ;;  %vm667_vm15 = vcmp.gt.s32.totalorder %v666_v34, 0  ;;  %v117_v48 = vadd.s32 %v116_v42, %v112_v58 }
  0x2e   :  { %v413_v12 = vshll.u32 %v409_v4, 16  ;;  %vm415_vm0 = vc.u32 %v407_v41, %v411_v8  ;;  %v417_v50 = vadd.s32 %v411_v8, %v407_v41  ;;  %v410_v53 = vmul.u32 %v406_v21, %v382_v29 }
  0x2f   :  { %v391_v51 = vshll.u32 %v387_v46, 16  ;;  %vm393_vm1 = vc.u32 %v385_v45, %v389_v47  ;;  %v395_v52 = vadd.s32 %v389_v47, %v385_v45  ;;  %v388_v55 = vmul.u32 %v384_v25, %v382_v29 }
  0x30   :  { %v416_v59 = vsel %vm415_vm0, 1, %v2439_v26  ;;  %v668_v38 = vsel %vm667_vm15, %v666_v34, 0  ;;  %v118_v56 = vadd.s32 536870912, %v117_v48  ;;  %v394_v54 = vsel %vm393_vm1, 1, %v2439_v26 }
  0x31   :  { %vm419_vm2 = vc.u32 %v417_v50, %v413_v12  ;;  %vm397_vm3 = vc.u32 %v395_v52, %v391_v51  ;;  %v418_v60 = vadd.s32 %v416_v59, %v410_v53  ;;  %v670_v63 = vand.u32 31, %v668_v38 }
  0x32   :  { %v396_v3 = vadd.s32 %v394_v54, %v388_v55  ;;  %v420_v7 = vsel %vm419_vm2, 1, %v2439_v26  ;;  %v2638_v9 = vshrl.u32 %v118_v56, 30  ;;  %v398_v10 = vsel %vm397_vm3, 1, %v2439_v26 }
  0x33   :  { %v412_v11 = vshrl.u32 %v408_v32, 16  ;;  %v422_v13 = vadd.s32 %v420_v7, %v418_v60  ;;  %v2641_v16 = vsub.s32 32, %v670_v63  ;;  %v390_v18 = vshrl.u32 %v386_v39, 16 }
  0x34   :  { %v400_v20 = vadd.s32 %v398_v10, %v396_v3  ;;  %v120_v21 = vshll.u32 %v2638_v9, 30  ;;  %v348_v23 = vshrl.u32 %v2433_v15, %v2533_v61  ;;  %v656_v25 = vand.u32 2147483647, %v2583_v49 }
  0x35   :  { %v369_v14 = vsel %vm367_vm10, %v2571_v44, 2102212464  ;;  %v392_v57 = vshrl.u32 %v387_v46, 16  ;;  %v414_v28 = vshrl.u32 %v409_v4, 16  ;;  %v423_v29 = vadd.s32 %v422_v13, %v412_v11  ;;  %v2719_v11 = vld [vmem:[%s3765_s0 + $0x18] sm:$0xff] }
  0x36   :  { %v685_v31 = vshll.u32 %v3778_v24, %v670_v63  ;;  %v686_v32 = vshrl.u32 %v3777_v30, %v2641_v16  ;;  %v401_v36 = vadd.s32 %v400_v20, %v390_v18  ;;  %v2653_v33 = vshrl.u32 %v668_v38, 5 }
  0x37   :  { %v682_v37 = vshll.u32 %v3771_v22, %v670_v63  ;;  %v683_v61 = vshrl.u32 %v3778_v24, %v2641_v16  ;;  %v2658_v39 = vsub.s32 %v117_v48, %v120_v21  ;;  %v368_v44 = vsel %vm364_vm11, %v348_v23, %v2566_v40 }
  0x38   :  { %v370_v34 = vsel %vm366_vm12, %v2569_v43, %v369_v14  ;;  %v663_v58 = vand.u32 8388607, %v656_v25  ;;  %v676_v41 = vshll.u32 %v3775_v17, %v670_v63  ;;  %v677_v4 = vshrl.u32 %v3773_v19, %v2641_v16 }
  0x39   :  { %v679_v8 = vshll.u32 %v3773_v19, %v670_v63  ;;  %v680_v42 = vshrl.u32 %v3771_v22, %v2641_v16  ;;  %v424_v45 = vadd.s32 %v423_v29, %v414_v28  ;;  %v673_v40 = vshll.u32 %v2433_v15, %v670_v63 }
  0x3a   :  { %v674_v46 = vshrl.u32 %v3775_v17, %v2641_v16  ;;  %v687_v43 = vor.u32 %v686_v32, %v685_v31  ;;  %v2677_v47 = vadd.s32 %v401_v36, %v392_v57  ;;  %v2679_v48 = vadd.s32 %v417_v50, %v413_v12 }
  0x3b   :  { %v684_v51 = vor.u32 %v683_v61, %v682_v37  ;;  %vm691_vm4 = vcmp.lt.s32.totalorder %v2653_v33, 4  ;;  %v371_v52 = vsel %vm365_vm13, %v368_v44, %v370_v34  ;;  %v123_v53 = vsub.s32 0, %v2658_v39 }
  0x3c   :  { %v2685_v55 = vor.u32 %v677_v4, %v676_v41  ;;  %v2687_v59 = vor.u32 %v680_v42, %v679_v8  ;;  %vm688_vm5 = vcmp.lt.s32.totalorder %v2653_v33, 1  ;;  %v428_v38 = vadd.s32 1, %v424_v45 }
  0x3d   :  { %v2690_v56 = vor.u32 %v674_v46, %v673_v40  ;;  %vm690_vm6 = vcmp.lt.s32.totalorder %v2653_v33, 3  ;;  %v701_v12 = vsel %vm691_vm4, %v687_v43, 1326507024  ;;  %vm122_vm7 = vcmp.lt.s32.totalorder %v2658_v39, 0 }
  0x3e   :  { %vm427_vm8 = vc.u32 %v2677_v47, %v2679_v48  ;;  %v664_v5 = vor.u32 8388608, %v663_v58  ;;  %v697_v50 = vsel %vm691_vm4, %v684_v51, 920167782  ;;  %v425_v54 = vmul.u32 %v2602_v62, %v371_v52 }
  0x3f   :  { %vm689_vm9 = vcmp.lt.s32.totalorder %v2653_v33, 2  ;;  %v700_v60 = vsel %vm688_vm5, %v2685_v55, %v2687_v59  ;;  %v702_v63 = vsel %vm690_vm6, %v684_v51, %v701_v12  ;;  %v124_v3 = vsel %vm122_vm7, %v123_v53, %v2658_v39 }
  0x40   :  { %v429_v7 = vsel %vm427_vm8, %v428_v38, %v424_v45  ;;  %v696_v10 = vsel %vm688_vm5, %v2690_v56, %v2685_v55  ;;  %v698_v62 = vsel %vm690_vm6, %v2687_v59, %v697_v50  ;;  %v2721_v13 = vshll.u32 %v664_v5, 8 }
  0x41   :  { %v703_v18 = vsel %vm689_vm9, %v700_v60, %v702_v63  ;;  %v125_v20 = vclz %v124_v3  ;;  %v430_v21 = vadd.s32 %v429_v7, %v425_v54  ;;  %v699_v23 = vsel %vm689_vm9, %v696_v10, %v698_v62 }
  0x42   :  { %v980_v14 = vand.u32 2139095040, %v2719_v11  ;;  %v705_v57 = vand.u32 65535, %v2721_v13  ;;  %v708_v28 = vshrl.u32 %v703_v18, 16  ;;  %v730_v29 = vshrl.u32 %v699_v23, 16 }
  0x43   :  { %v2370_v31 = vadd.s32 4294967294, %v125_v20  ;;  %v431_v32 = vadd.s32 536870912, %v430_v21  ;;  %v706_v37 = vshrl.u32 %v2721_v13, 16  ;;  %v707_v61 = vand.u32 65535, %v703_v18 }
  0x44   :  { %v981_v36 = vshrl.u32 %v980_v14, 23  ;;  %v2730_v44 = vmul.u32 %v708_v28, %v705_v57  ;;  %v729_v34 = vand.u32 65535, %v699_v23  ;;  %v2732_v58 = vmul.u32 %v730_v29, %v705_v57 }
  0x45   :  { %vm2371_vm10 = vcmp.lt.s32.totalorder %v2370_v31, 0  ;;  %v2734_v41 = vshrl.u32 %v431_v32, 30  ;;  %v709_v8 = vmul.u32 %v707_v61, %v705_v57  ;;  %v2736_v42 = vmul.u32 %v707_v61, %v706_v37 }
  0x46   :  { %v2390_v4 = vadd.s32 4294967169, %v981_v36  ;;  %v713_v45 = vshll.u32 %v2730_v44, 16  ;;  %v128_v46 = vsel %vm2371_vm10, 0, %v2370_v31  ;;  %v731_v43 = vmul.u32 %v729_v34, %v705_v57 }
  0x47   :  { %v2739_v51 = vmul.u32 %v729_v34, %v706_v37  ;;  %v735_v52 = vshll.u32 %v2732_v58, 16  ;;  %v433_v53 = vshll.u32 %v2734_v41, 30  ;;  %v113_v38 = vadd.s32 %v2627_v35, %v2622_v27 }
  0x48   :  { %v987_v40 = vadd.s32 1, %v2390_v4  ;;  %v129_v12 = vsub.s32 32, %v128_v46  ;;  %v133_v5 = vsub.s32 4294967266, %v128_v46  ;;  %v715_v50 = vshll.u32 %v2736_v42, 16 }
  0x49   :  { %vm717_vm12 = vc.u32 %v709_v8, %v713_v45  ;;  %v719_v54 = vadd.s32 %v713_v45, %v709_v8  ;;  %v737_v60 = vshll.u32 %v2739_v51, 16  ;;  %vm739_vm13 = vc.u32 %v731_v43, %v735_v52 }
  0x4a   :  { %vm988_vm11 = vcmp.gt.s32.totalorder %v987_v40, 0  ;;  %v2747_v63 = vadd.s32 %v735_v52, %v731_v43  ;;  %v2749_v7 = vsub.s32 %v430_v21, %v433_v53  ;;  %v712_v10 = vmul.u32 %v708_v28, %v706_v37 }
  0x4b   :  { %v989_v3 = vsel %vm988_vm11, %v987_v40, 0  ;;  %v718_v62 = vsel %vm717_vm12, 1, %v2439_v26  ;;  %v734_v18 = vmul.u32 %v730_v29, %v706_v37  ;;  %vm721_vm14 = vc.u32 %v719_v54, %v715_v50 }
  0x4c   :  { %v740_v27 = vsel %vm739_vm13, 1, %v2439_v26  ;;  %v991_v35 = vand.u32 31, %v989_v3  ;;  %v130_v20 = vshll.u32 %v2658_v39, %v128_v46  ;;  %v131_v23 = vshrl.u32 %v113_v38, %v129_v12 }
  0x4d   :  { %v134_v14 = vadd.s32 127, %v133_v5  ;;  %vm743_vm15 = vc.u32 %v2747_v63, %v737_v60  ;;  %v436_v57 = vsub.s32 0, %v2749_v7  ;;  %v720_v21 = vadd.s32 %v718_v62, %v712_v10 }
  0x4e   :  { %vm435_vm0 = vcmp.lt.s32.totalorder %v2749_v7, 0  ;;  %v722_v28 = vsel %vm721_vm14, 1, %v2439_v26  ;;  %v742_v29 = vadd.s32 %v740_v27, %v734_v18  ;;  %v3769_v31 = vand.u32 2147483647, %v2719_v11 }
  0x4f   :  { %v744_v32 = vsel %vm743_vm15, 1, %v2439_v26  ;;  %v2762_v36 = vsub.s32 32, %v991_v35  ;;  %v2764_v39 = vor.u32 %v131_v23, %v130_v20  ;;  %v135_v37 = vshll.u32 %v134_v14, 23  ;;  %v2801_v23 = vld [vmem:[%s3765_s0 + $0x20] sm:$0xff] }
  0x50   :  { %v672_v61 = vshrl.u32 %v2433_v15, %v2641_v16  ;;  %v437_v34 = vsel %vm435_vm0, %v436_v57, %v2749_v7  ;;  %v714_v4 = vshrl.u32 %v2730_v44, 16  ;;  %v724_v8 = vadd.s32 %v722_v28, %v720_v21 }
  0x51   :  { %v736_v45 = vshrl.u32 %v2732_v58, 16  ;;  %v746_v40 = vadd.s32 %v744_v32, %v742_v29  ;;  %v984_v46 = vand.u32 8388607, %v3769_v31  ;;  %v994_v43 = vshll.u32 %v2433_v15, %v991_v35 }
  0x52   :  { %v997_v52 = vshll.u32 %v3775_v17, %v991_v35  ;;  %v995_v53 = vshrl.u32 %v3775_v17, %v2762_v36  ;;  %v998_v16 = vshrl.u32 %v3773_v19, %v2762_v36  ;;  %v1003_v38 = vshll.u32 %v3771_v22, %v991_v35 }
  0x53   :  { %v1004_v44 = vshrl.u32 %v3778_v24, %v2762_v36  ;;  %v692_v58 = vsel %vm688_vm5, %v672_v61, %v2690_v56  ;;  %v2785_v12 = vshrl.u32 %v989_v3, 5  ;;  %v1000_v5 = vshll.u32 %v3773_v19, %v991_v35 }
  0x54   :  { %v1001_v50 = vshrl.u32 %v3771_v22, %v2762_v36  ;;  %v438_v54 = vclz %v437_v34  ;;  %v693_v10 = vsel %vm691_vm4, %v2687_v59, 2102212464  ;;  %v716_v62 = vshrl.u32 %v2736_v42, 16 }
  0x55   :  { %v738_v18 = vshrl.u32 %v2739_v51, 16  ;;  %v747_v27 = vadd.s32 %v746_v40, %v736_v45  ;;  %v985_v20 = vor.u32 8388608, %v984_v46  ;;  %v1006_v56 = vshll.u32 %v3778_v24, %v991_v35 }
  0x56   :  { %v1007_v3 = vshrl.u32 %v3777_v30, %v2762_v36  ;;  %v725_v14 = vadd.s32 %v724_v8, %v714_v4  ;;  %v2803_v57 = vor.u32 %v995_v53, %v994_v43  ;;  %v2805_v59 = vor.u32 %v998_v16, %v997_v52 }
  0x57   :  { %v1005_v42 = vor.u32 %v1004_v44, %v1003_v38  ;;  %v136_v21 = vor.u32 4788187, %v135_v37  ;;  %v694_v28 = vsel %vm690_vm6, %v2685_v55, %v693_v10  ;;  %v2810_v35 = vor.u32 %v1001_v50, %v1000_v5 }
  0x58   :  { %vm1009_vm1 = vcmp.lt.s32.totalorder %v2785_v12, 1  ;;  %v2377_v29 = vadd.s32 4294967294, %v438_v54  ;;  %vm1011_vm2 = vcmp.lt.s32.totalorder %v2785_v12, 3  ;;  %vm1012_vm3 = vcmp.lt.s32.totalorder %v2785_v12, 4 }
  0x59   :  { %v1319_v32 = vand.u32 2139095040, %v2801_v23  ;;  %v748_v61 = vadd.s32 %v747_v27, %v738_v18  ;;  %v1008_v34 = vor.u32 %v1007_v3, %v1006_v56  ;;  %vm1010_vm4 = vcmp.lt.s32.totalorder %v2785_v12, 2 }
  0x5a   :  { %v2817_v37 = vshll.u32 %v985_v20, 8  ;;  %v2819_v4 = vadd.s32 %v725_v14, %v716_v62  ;;  %v2824_v55 = vadd.s32 %v2747_v63, %v737_v60  ;;  %v1017_v8 = vsel %vm1009_vm1, %v2803_v57, %v2805_v59 }
  0x5b   :  { %v1018_v45 = vsel %vm1012_vm3, %v1005_v42, 920167782  ;;  %v139_v40 = vcvt.s32.f32 %v2764_v39  ;;  %vm2378_vm5 = vcmp.lt.s32.totalorder %v2377_v29, 0  ;;  %v695_v51 = vsel %vm689_vm9, %v692_v58, %v694_v28 }
  0x5c   :  { %v1019_v46 = vsel %vm1011_vm2, %v2810_v35, %v1018_v45  ;;  %v1320_v63 = vshrl.u32 %v1319_v32, 23  ;;  %v752_v43 = vadd.s32 1, %v748_v61  ;;  %v1021_v52 = vsel %vm1009_vm1, %v2805_v59, %v2810_v35 }
  0x5d   :  { %v1020_v60 = vsel %vm1010_vm4, %v1017_v8, %v1019_v46  ;;  %v1022_v39 = vsel %vm1012_vm3, %v1008_v34, 1326507024  ;;  %v1026_v53 = vand.u32 65535, %v2817_v37  ;;  %v137_v16 = vand.u32 2147483647, %v136_v21 }
  0x5e   :  { %vm751_vm6 = vc.u32 %v2819_v4, %v2824_v55  ;;  %v1023_v33 = vsel %vm1011_vm2, %v1005_v42, %v1022_v39  ;;  %v1027_v38 = vshrl.u32 %v2817_v37, 16  ;;  %v749_v44 = vmul.u32 %v2721_v13, %v695_v51 }
  0x5f   :  { %v1024_v58 = vsel %vm1010_vm4, %v1021_v52, %v1023_v33  ;;  %v1050_v5 = vand.u32 65535, %v1020_v60  ;;  %v1051_v50 = vshrl.u32 %v1020_v60, 16  ;;  %v441_v54 = vsel %vm2378_vm5, 0, %v2377_v29 }
  0x60   :  { %v1028_v10 = vand.u32 65535, %v1024_v58  ;;  %v1029_v62 = vshrl.u32 %v1024_v58, 16  ;;  %v2397_v18 = vadd.s32 4294967169, %v1320_v63  ;;  %v753_v27 = vsel %vm751_vm6, %v752_v43, %v748_v61 }
  0x61   :  { %v1052_v20 = vmul.u32 %v1050_v5, %v1026_v53  ;;  %v1053_v56 = vmul.u32 %v1051_v50, %v1026_v53  ;;  %v2856_v3 = vmul.u32 %v1050_v5, %v1027_v38  ;;  %v140_v13 = vmul.f32 %v139_v40, %v137_v16 }
  0x62   :  { %v1030_v14 = vmul.u32 %v1028_v10, %v1026_v53  ;;  %v1031_v42 = vmul.u32 %v1029_v62, %v1026_v53  ;;  %v2858_v21 = vmul.u32 %v1028_v10, %v1027_v38  ;;  %v446_v28 = vsub.s32 4294967266, %v441_v54 }
  0x63   :  { %v1056_v32 = vshll.u32 %v1053_v56, 16  ;;  %v2860_v34 = vadd.s32 %v753_v27, %v749_v44  ;;  %v1326_v45 = vadd.s32 1, %v2397_v18  ;;  %v1033_v46 = vmul.u32 %v1029_v62, %v1027_v38 }
  0x64   :  { %v1034_v8 = vshll.u32 %v1031_v42, 16  ;;  %v1036_v29 = vshll.u32 %v2858_v21, 16  ;;  %v1055_v51 = vmul.u32 %v1051_v50, %v1027_v38  ;;  %v1058_v61 = vshll.u32 %v2856_v3, 16 }
  0x65   :  { %vm1060_vm7 = vc.u32 %v1052_v20, %v1056_v32  ;;  %v426_v60 = vadd.s32 %v2679_v48, %v2677_v47  ;;  %v442_v43 = vsub.s32 32, %v441_v54  ;;  %v447_v52 = vadd.s32 127, %v446_v28 }
  0x66   :  { %vm1038_vm8 = vc.u32 %v1030_v14, %v1034_v8  ;;  %v1040_v63 = vadd.s32 %v1034_v8, %v1030_v14  ;;  %v1061_v40 = vsel %vm1060_vm7, 1, %v2439_v26  ;;  %v1062_v53 = vadd.s32 %v1056_v32, %v1052_v20 }
  0x67   :  { %v1039_v39 = vsel %vm1038_vm8, 1, %v2439_v26  ;;  %v141_v16 = vxor.u32 2147483648, %v140_v13  ;;  %v755_v33 = vadd.s32 536870912, %v2860_v34  ;;  %vm1327_vm10 = vcmp.gt.s32.totalorder %v1326_v45, 0 }
  0x68   :  { %vm1042_vm9 = vc.u32 %v1040_v63, %v1036_v29  ;;  %vm21_vm11 = vcmp.lt.s32.totalorder %v2458_v0, 0  ;;  %v1041_v38 = vadd.s32 %v1039_v39, %v1033_v46  ;;  %v1063_v44 = vadd.s32 %v1061_v40, %v1055_v51 }
  0x69   :  { %vm1064_vm12 = vc.u32 %v1062_v53, %v1058_v61  ;;  %v1043_v47 = vsel %vm1042_vm9, 1, %v2439_v26  ;;  %v1328_v58 = vsel %vm1327_vm10, %v1326_v45, 0  ;;  %v443_v5 = vshll.u32 %v2749_v7, %v441_v54 }
  0x6a   :  { %v1065_v48 = vsel %vm1064_vm12, 1, %v2439_v26  ;;  %v444_v50 = vshrl.u32 %v426_v60, %v442_v43  ;;  %v448_v10 = vshll.u32 %v447_v52, 23  ;;  %vm2875_vm13 = vcmp.le.f32.partialorder %v19_v6, 0.7853982 }
  0x6b   :  { %v142_v18 = vsel %vm21_vm11, %v141_v16, %v140_v13  ;;  %v2881_v27 = vshrl.u32 %v755_v33, 30  ;;  %v1330_v20 = vand.u32 31, %v1328_v58  ;;  %v1035_v14 = vshrl.u32 %v1031_v42, 16 }
  0x6c   :  { %v1045_v28 = vadd.s32 %v1043_v47, %v1041_v38  ;;  %v1057_v32 = vshrl.u32 %v1053_v56, 16  ;;  %v1067_v8 = vadd.s32 %v1065_v48, %v1063_v44  ;;  %v2888_v7 = vsel %vm2875_vm13, %v2458_v0, %v142_v18 }
  0x6d   :  { %v2883_v29 = vsub.s32 32, %v1330_v20  ;;  %v445_v6 = vor.u32 %v444_v50, %v443_v5  ;;  %v449_v54 = vor.u32 4788187, %v448_v10  ;;  %v3768_v45 = vand.u32 2147483647, %v2801_v23 }
  0x6e   :  { %v757_v13 = vshll.u32 %v2881_v27, 30  ;;  %v993_v46 = vshrl.u32 %v2433_v15, %v2762_v36  ;;  %v1014_v56 = vsel %vm1012_vm3, %v2810_v35, 2102212464  ;;  %v1037_v42 = vshrl.u32 %v2858_v21, 16 }
  0x6f   :  { %v1046_v51 = vadd.s32 %v1045_v28, %v1035_v14  ;;  %v1059_v60 = vshrl.u32 %v2856_v3, 16  ;;  %v1068_v63 = vadd.s32 %v1067_v8, %v1057_v32  ;;  %v2899_v40 = vshrl.u32 %v1328_v58, 5 }
  0x70   :  { %v1333_v43 = vshll.u32 %v2433_v15, %v1330_v20  ;;  %v1334_v52 = vshrl.u32 %v3775_v17, %v2883_v29  ;;  %v1342_v39 = vshll.u32 %v3771_v22, %v1330_v20  ;;  %v1343_v36 = vshrl.u32 %v3778_v24, %v2883_v29 }
  0x71   :  { %v1336_v35 = vshll.u32 %v3775_v17, %v1330_v20  ;;  %v1337_v21 = vshrl.u32 %v3773_v19, %v2883_v29  ;;  %v1339_v3 = vshll.u32 %v3773_v19, %v1330_v20  ;;  %v1340_v16 = vshrl.u32 %v3771_v22, %v2883_v29 }
  0x72   :  { %v450_v33 = vand.u32 2147483647, %v449_v54  ;;  %v452_v38 = vcvt.s32.f32 %v445_v6  ;;  %v1323_v44 = vand.u32 8388607, %v3768_v45  ;;  %v1344_v47 = vor.u32 %v1343_v36, %v1342_v39 }
  0x73   :  { %v2916_v48 = vsub.s32 %v2860_v34, %v757_v13  ;;  %v1013_v58 = vsel %vm1009_vm1, %v993_v46, %v2803_v57  ;;  %v1015_v5 = vsel %vm1011_vm2, %v2805_v59, %v1014_v56  ;;  %v1069_v50 = vadd.s32 %v1068_v63, %v1059_v60 }
  0x74   :  { %v2924_v10 = vadd.s32 %v1046_v51, %v1037_v42  ;;  %v2926_v18 = vadd.s32 %v1062_v53, %v1058_v61  ;;  %v2928_v14 = vor.u32 %v1334_v52, %v1333_v43  ;;  %vm1351_vm14 = vcmp.lt.s32.totalorder %v2899_v40, 4 }
  0x75   :  { %v2931_v28 = vor.u32 %v1337_v21, %v1336_v35  ;;  %v2933_v34 = vor.u32 %v1340_v16, %v1339_v3  ;;  %v1345_v32 = vshll.u32 %v3778_v24, %v1330_v20  ;;  %v1346_v57 = vshrl.u32 %v3777_v30, %v2883_v29 }
  0x76   :  { %v1324_v8 = vor.u32 8388608, %v1323_v44  ;;  %vm1348_vm15 = vcmp.lt.s32.totalorder %v2899_v40, 1  ;;  %vm1350_vm0 = vcmp.lt.s32.totalorder %v2899_v40, 3  ;;  %v1357_v59 = vsel %vm1351_vm14, %v1344_v47, 920167782 }
  0x77   :  { %v2944_v61 = vmul.f32 %v2888_v7, %v2888_v7  ;;  %v1016_v53 = vsel %vm1010_vm4, %v1013_v58, %v1015_v5  ;;  %v1073_v6 = vadd.s32 1, %v1069_v50  ;;  %v453_v20 = vmul.f32 %v452_v38, %v450_v33 }
  0x78   :  { %v760_v54 = vsub.s32 0, %v2916_v48  ;;  %vm1072_vm1 = vc.u32 %v2924_v10, %v2926_v18  ;;  %v1347_v13 = vor.u32 %v1346_v57, %v1345_v32  ;;  %vm1349_vm2 = vcmp.lt.s32.totalorder %v2899_v40, 2 }
  0x79   :  { %v1356_v46 = vsel %vm1348_vm15, %v2928_v14, %v2931_v28  ;;  %v1358_v12 = vsel %vm1350_vm0, %v2933_v34, %v1357_v59  ;;  %vm759_vm3 = vcmp.lt.s32.totalorder %v2916_v48, 0  ;;  %v1070_v56 = vmul.u32 %v2817_v37, %v1016_v53 }
  0x7a   :  { %v2961_v42 = vshll.u32 %v1324_v8, 8  ;;  %v155_v51 = vmul.f32 -0.00019511016, %v2944_v61  ;;  %v1074_v60 = vsel %vm1072_vm1, %v1073_v6, %v1069_v50  ;;  %v143_v63 = vsub.s32 4, %v2638_v9 }
  0x7b   :  { %v148_v43 = vmul.f32 -0.001358992, %v2944_v61  ;;  %vm334_vm4 = vcmp.lt.s32.totalorder %v2464_v2, 0  ;;  %v1359_v52 = vsel %vm1349_vm2, %v1356_v46, %v1358_v12  ;;  %v454_v39 = vxor.u32 2147483648, %v453_v20  ;;  %v2996_v46 = vld [vmem:[%s3765_s0 + $0x28] sm:$0xff] }
  0x7c   :  { %v761_v36 = vsel %vm759_vm3, %v760_v54, %v2916_v48  ;;  %v1360_v37 = vsel %vm1348_vm15, %v2931_v28, %v2933_v34  ;;  %v1361_v35 = vsel %vm1351_vm14, %v1347_v13, 1326507024  ;;  %v1075_v21 = vadd.s32 %v1074_v60, %v1070_v56 }
  0x7d   :  { %v1362_v3 = vsel %vm1350_vm0, %v1344_v47, %v1361_v35  ;;  %v1365_v16 = vand.u32 65535, %v2961_v42  ;;  %v1390_v33 = vshrl.u32 %v1359_v52, 16  ;;  %v156_v38 = vadd.f32 0.008332121, %v155_v51 }
  0x7e   :  { %v1363_v44 = vsel %vm1349_vm2, %v1360_v37, %v1362_v3  ;;  %v1366_v58 = vshrl.u32 %v2961_v42, 16  ;;  %v762_v5 = vclz %v761_v36  ;;  %v144_v57 = vsel %vm21_vm11, %v143_v63, %v2638_v9 }
  0x7f   :  { %v1367_v50 = vand.u32 65535, %v1363_v44  ;;  %v1368_v32 = vshrl.u32 %v1363_v44, 16  ;;  %vm2987_vm5 = vcmp.le.f32.partialorder %v332_v1, 0.7853982  ;;  %v455_v8 = vsel %vm334_vm4, %v454_v39, %v453_v20 }
  0x80   :  { %v1389_v59 = vand.u32 65535, %v1359_v52  ;;  %v149_v53 = vadd.f32 0.041655596, %v148_v43  ;;  %v1076_v6 = vadd.s32 536870912, %v1075_v21  ;;  %v1392_v13 = vmul.u32 %v1390_v33, %v1365_v16 }
  0x81   :  { %v1370_v54 = vmul.u32 %v1368_v32, %v1365_v16  ;;  %v157_v0 = vmul.f32 %v156_v38, %v2944_v61  ;;  %v1371_v9 = vmul.u32 %v1367_v50, %v1366_v58  ;;  %v3001_v1 = vsel %vm2875_vm13, 0, %v144_v57 }
  0x82   :  { %v456_v12 = vsub.s32 4, %v2734_v41  ;;  %v3007_v20 = vsel %vm2987_vm5, %v2464_v2, %v455_v8  ;;  %v2384_v56 = vadd.s32 4294967294, %v762_v5  ;;  %v1369_v51 = vmul.u32 %v1367_v50, %v1365_v16 }
  0x83   :  { %v1373_v60 = vshll.u32 %v1370_v54, 16  ;;  %v1393_v63 = vmul.u32 %v1389_v59, %v1366_v58  ;;  %v1673_v43 = vand.u32 2139095040, %v2996_v46  ;;  %v150_v52 = vmul.f32 %v149_v53, %v2944_v61 }
  0x84   :  { %v3011_v39 = vshrl.u32 %v1076_v6, 30  ;;  %v1391_v62 = vmul.u32 %v1389_v59, %v1365_v16  ;;  %v1395_v36 = vshll.u32 %v1392_v13, 16  ;;  %v158_v37 = vadd.f32 -0.16666654, %v157_v0 }
  0x85   :  { %v3015_v35 = vmul.f32 %v3007_v20, %v3007_v20  ;;  %v1372_v3 = vmul.u32 %v1368_v32, %v1366_v58  ;;  %v1375_v38 = vshll.u32 %v1371_v9, 16  ;;  %vm2385_vm6 = vcmp.lt.s32.totalorder %v2384_v56, 0 }
  0x86   :  { %v1332_v44 = vshrl.u32 %v2433_v15, %v2883_v29  ;;  %v1353_v5 = vsel %vm1351_vm14, %v2933_v34, 2102212464  ;;  %v1394_v50 = vmul.u32 %v1390_v33, %v1366_v58  ;;  %vm1377_vm7 = vc.u32 %v1369_v51, %v1373_v60 }
  0x87   :  { %v1379_v57 = vadd.s32 %v1373_v60, %v1369_v51  ;;  %v1397_v16 = vshll.u32 %v1393_v63, 16  ;;  %v1674_v8 = vshrl.u32 %v1673_v43, 23  ;;  %v1078_v59 = vshll.u32 %v3011_v39, 30 }
  0x88   :  { %v1374_v53 = vshrl.u32 %v1370_v54, 16  ;;  %v1378_v6 = vsel %vm1377_vm7, 1, %v2439_v26  ;;  %vm1399_vm8 = vc.u32 %v1391_v62, %v1395_v36  ;;  %v1401_v29 = vadd.s32 %v1395_v36, %v1391_v62 }
  0x89   :  { %v1380_v32 = vadd.s32 %v1378_v6, %v1372_v3  ;;  %vm1381_vm9 = vc.u32 %v1379_v57, %v1375_v38  ;;  %v1400_v0 = vsel %vm1399_vm8, 1, %v2439_v26  ;;  %v765_v45 = vsel %vm2385_vm6, 0, %v2384_v56 }
  0x8a   :  { %v1382_v34 = vsel %vm1381_vm9, 1, %v2439_v26  ;;  %v1396_v33 = vshrl.u32 %v1392_v13, 16  ;;  %v1402_v58 = vadd.s32 %v1400_v0, %v1394_v50  ;;  %v1376_v51 = vshrl.u32 %v1371_v9, 16 }
  0x8b   :  { %v1384_v60 = vadd.s32 %v1382_v34, %v1380_v32  ;;  %vm1403_vm10 = vc.u32 %v1401_v29, %v1397_v16  ;;  %v2404_v43 = vadd.s32 4294967169, %v1674_v8  ;;  %v3027_v31 = vsub.s32 %v1075_v21, %v1078_v59 }
  0x8c   :  { %v1352_v54 = vsel %vm1348_vm15, %v1332_v44, %v2928_v14  ;;  %v1354_v62 = vsel %vm1350_vm0, %v2931_v28, %v1353_v5  ;;  %v1404_v56 = vsel %vm1403_vm10, 1, %v2439_v26  ;;  %v1398_v3 = vshrl.u32 %v1393_v63, 16 }
  0x8d   :  { %v1385_v36 = vadd.s32 %v1384_v60, %v1374_v53  ;;  %v1406_v13 = vadd.s32 %v1404_v56, %v1402_v58  ;;  %v1680_v38 = vadd.s32 1, %v2404_v43  ;;  %v317_v9 = vadd.s32 3, %v3001_v1 }
  0x8e   :  { %v457_v21 = vsel %vm334_vm4, %v456_v12, %v2734_v41  ;;  %v770_v50 = vsub.s32 4294967266, %v765_v45  ;;  %v3040_v57 = vadd.s32 %v1401_v29, %v1397_v16  ;;  %v151_v14 = vadd.f32 -0.4999988, %v150_v52 }
  0x8f   :  { %v3042_v44 = vadd.s32 %v1385_v36, %v1376_v51  ;;  %v1407_v8 = vadd.s32 %v1406_v13, %v1396_v33  ;;  %vm1681_vm11 = vcmp.gt.s32.totalorder %v1680_v38, 0  ;;  %v159_v28 = vmul.f32 %v158_v37, %v2944_v61 }
  0x90   :  { %v468_v63 = vmul.f32 -0.00019511016, %v3015_v35  ;;  %v1355_v5 = vsel %vm1349_vm2, %v1352_v54, %v1354_v62  ;;  %v1682_v59 = vsel %vm1681_vm11, %v1680_v38, 0  ;;  %v750_v2 = vadd.s32 %v2824_v55, %v2819_v4 }
  0x91   :  { %v766_v41 = vsub.s32 32, %v765_v45  ;;  %v1081_v12 = vsub.s32 0, %v3027_v31  ;;  %v1408_v16 = vadd.s32 %v1407_v8, %v1398_v3  ;;  %v771_v52 = vadd.s32 127, %v770_v50 }
  0x92   :  { %vm1080_vm12 = vcmp.lt.s32.totalorder %v3027_v31, 0  ;;  %vm1411_vm13 = vc.u32 %v3042_v44, %v3040_v57  ;;  %v1684_v37 = vand.u32 31, %v1682_v59  ;;  %v461_v53 = vmul.f32 -0.001358992, %v3015_v35 }
  0x93   :  { %v1409_v40 = vmul.u32 %v2961_v42, %v1355_v5  ;;  %v1412_v6 = vadd.s32 1, %v1408_v16  ;;  %v3057_v32 = vand.u32 3, %v3001_v1  ;;  %v3059_v4 = vand.u32 3, %v317_v9 }
  0x94   :  { %v459_v55 = vsel %vm2987_vm5, 0, %v457_v21  ;;  %v469_v0 = vadd.f32 0.008332121, %v468_v63  ;;  %v152_v29 = vmul.f32 %v151_v14, %v2944_v61  ;;  %v160_v34 = vadd.f32 1.0, %v159_v28 }
  0x95   :  { %v1082_v33 = vsel %vm1080_vm12, %v1081_v12, %v3027_v31  ;;  %v1413_v58 = vsel %vm1411_vm13, %v1412_v6, %v1408_v16  ;;  %v767_v51 = vshll.u32 %v2916_v48, %v765_v45  ;;  %v768_v60 = vshrl.u32 %v750_v2, %v766_v41 }
  0x96   :  { %v772_v42 = vshll.u32 %v771_v52, 23  ;;  %v3066_v43 = vsub.s32 32, %v1684_v37  ;;  %v462_v1 = vadd.f32 0.041655596, %v461_v53  ;;  %v3068_v54 = vadd.s32 %v1413_v58, %v1409_v40 }
  0x97   :  { %vm168_vm14 = vcmp.eq.s32.totalorder %v3057_v32, 2  ;;  %v470_v47 = vmul.f32 %v469_v0, %v3015_v35  ;;  %v1083_v62 = vclz %v1082_v33  ;;  %v3072_v56 = vadd.f32 1.0, %v152_v29 }
  0x98   :  { %v3075_v61 = vmul.f32 %v160_v34, %v2888_v7  ;;  %vm323_vm15 = vcmp.eq.s32.totalorder %v3059_v4, 2  ;;  %v3078_v45 = vand.u32 3, %v459_v55  ;;  %v630_v48 = vadd.s32 3, %v459_v55 }
  0x99   :  { %v769_v36 = vor.u32 %v768_v60, %v767_v51  ;;  %v773_v3 = vor.u32 4788187, %v772_v42  ;;  %v1699_v13 = vshll.u32 %v3778_v24, %v1684_v37  ;;  %v1700_v38 = vshrl.u32 %v3777_v30, %v3066_v43  ;;  %v2426_v42 = vld [vmem:[%s3765_s0] sm:$0xff] }
  0x9a   :  { %vm165_vm0 = vcmp.eq.s32.totalorder %v3057_v32, 0  ;;  %vm320_vm1 = vcmp.eq.s32.totalorder %v3059_v4, 0  ;;  %v463_v9 = vmul.f32 %v462_v1, %v3015_v35  ;;  %v1415_v7 = vadd.s32 536870912, %v3068_v54 }
  0x9b   :  { %v3770_v21 = vand.u32 2147483647, %v2996_v46  ;;  %v3088_v50 = vshrl.u32 %v1682_v59, 5  ;;  %v471_v14 = vadd.f32 -0.16666654, %v470_v47  ;;  %v2391_v8 = vadd.s32 4294967294, %v1083_v62 }
  0x9c   :  { %v1690_v28 = vshll.u32 %v3775_v17, %v1684_v37  ;;  %v1693_v63 = vshll.u32 %v3773_v19, %v1684_v37  ;;  %v1691_v5 = vshrl.u32 %v3773_v19, %v3066_v43  ;;  %v1694_v2 = vshrl.u32 %v3771_v22, %v3066_v43 }
  0x9d   :  { %v1696_v41 = vshll.u32 %v3771_v22, %v1684_v37  ;;  %v1697_v12 = vshrl.u32 %v3778_v24, %v3066_v43  ;;  %vm164_vm2 = vcmp.lt.s32.totalorder %v3057_v32, 2  ;;  %v169_v59 = vxor.u32 2147483648, %v3072_v56 }
  0x9e   :  { %vm319_vm3 = vcmp.lt.s32.totalorder %v3059_v4, 2  ;;  %v774_v16 = vand.u32 2147483647, %v773_v3  ;;  %v776_v52 = vcvt.s32.f32 %v769_v36  ;;  %v1701_v53 = vor.u32 %v1700_v38, %v1699_v13 }
  0x9f   :  { %v464_v40 = vadd.f32 -0.4999988, %v463_v9  ;;  %vm658_vm4 = vcmp.lt.s32.totalorder %v2583_v49, 0  ;;  %v3103_v6 = vshrl.u32 %v1415_v7, 30  ;;  %v1677_v55 = vand.u32 8388607, %v3770_v21 }
  0xa0   :  { %vm1705_vm5 = vcmp.lt.s32.totalorder %v3088_v50, 4  ;;  %v472_v0 = vmul.f32 %v471_v14, %v3015_v35  ;;  %vm2392_vm6 = vcmp.lt.s32.totalorder %v2391_v8, 0  ;;  %v1687_v29 = vshll.u32 %v2433_v15, %v1684_v37 }
  0xa1   :  { %v1688_v34 = vshrl.u32 %v3775_v17, %v3066_v43  ;;  %v166_v33 = vxor.u32 2147483648, %v3075_v61  ;;  %v3113_v58 = vor.u32 %v1691_v5, %v1690_v28  ;;  %v3115_v51 = vor.u32 %v1694_v2, %v1693_v63 }
  0xa2   :  { %v1698_v60 = vor.u32 %v1697_v12, %v1696_v41  ;;  %vm162_vm7 = vweird.f32 %v2426_v42  ;;  %v777_v1 = vmul.f32 %v776_v52, %v774_v16  ;;  %vm1702_vm8 = vcmp.lt.s32.totalorder %v3088_v50, 1 }
  0xa3   :  { %vm1704_vm9 = vcmp.lt.s32.totalorder %v3088_v50, 3  ;;  %v1715_v37 = vsel %vm1705_vm5, %v1701_v53, 1326507024  ;;  %v170_v47 = vsel %vm168_vm14, %v169_v59, %v3075_v61  ;;  %vm3129_vm10 = vcmp.le.f32.partialorder %v656_v25, 0.7853982 }
  0xa4   :  { %v3133_v36 = vsel %vm2392_vm6, 0, %v2391_v8  ;;  %v1417_v3 = vshll.u32 %v3103_v6, 30  ;;  %v1678_v13 = vor.u32 8388608, %v1677_v55  ;;  %v325_v38 = vsel %vm323_vm15, %v169_v59, %v3075_v61 }
  0xa5   :  { %v465_v9 = vmul.f32 %v464_v40, %v3015_v35  ;;  %v473_v7 = vadd.f32 1.0, %v472_v0  ;;  %v3140_v14 = vor.u32 %v1688_v34, %v1687_v29  ;;  %vm1703_vm11 = vcmp.lt.s32.totalorder %v3088_v50, 2  ;;  %v3287_v50 = vld [vmem:[%s3765_s0 + $0x18] sm:$0xff] }
  0xa6   :  { %v1711_v25 = vsel %vm1705_vm5, %v1698_v60, 920167782  ;;  %v1714_v8 = vsel %vm1702_vm8, %v3113_v58, %v3115_v51  ;;  %v1716_v28 = vsel %vm1704_vm9, %v1698_v60, %v1715_v37  ;;  %v167_v35 = vsel %vm165_vm0, %v3072_v56, %v166_v33  ;;  %v3203_v37 = vld [vmem:[%s3765_s0 + $0x30] sm:$0xff] }
  0xa7   :  { %v322_v61 = vsel %vm320_vm1, %v3072_v56, %v166_v33  ;;  %v778_v63 = vxor.u32 2147483648, %v777_v1  ;;  %v1091_v5 = vsub.s32 4294967266, %v3133_v36  ;;  %vm478_vm12 = vcmp.eq.s32.totalorder %v3078_v45, 0 }
  0xa8   :  { %v3159_v2 = vand.u32 3, %v630_v48  ;;  %v3162_v41 = vsub.s32 %v3068_v54, %v1417_v3  ;;  %v3164_v12 = vshll.u32 %v1678_v13, 8  ;;  %vm481_vm13 = vcmp.eq.s32.totalorder %v3078_v45, 2  ;;  %v3208_v3 = vld [vmem:[%s3765_s0 + $0x10] sm:$0xff] }
  0xa9   :  { %v1710_v59 = vsel %vm1702_vm8, %v3140_v14, %v3113_v58  ;;  %v1712_v56 = vsel %vm1704_vm9, %v3115_v51, %v1711_v25  ;;  %v1717_v48 = vsel %vm1703_vm11, %v1714_v8, %v1716_v28  ;;  %v171_v54 = vsel %vm164_vm2, %v167_v35, %v170_v47 }
  0xaa   :  { %v326_v16 = vsel %vm319_vm3, %v322_v61, %v325_v38  ;;  %v466_v52 = vadd.f32 1.0, %v465_v9  ;;  %v474_v53 = vmul.f32 %v473_v7, %v3007_v20  ;;  %v779_v40 = vsel %vm658_vm4, %v778_v63, %v777_v1 }
  0xab   :  { %v1071_v55 = vadd.s32 %v2926_v18, %v2924_v10  ;;  %v1087_v0 = vsub.s32 32, %v3133_v36  ;;  %v1092_v29 = vadd.s32 127, %v1091_v5  ;;  %v1420_v34 = vsub.s32 0, %v3162_v41 }
  0xac   :  { %v1713_v32 = vsel %vm1703_vm11, %v1710_v59, %v1712_v56  ;;  %v1719_v4 = vand.u32 65535, %v3164_v12  ;;  %v1722_v33 = vshrl.u32 %v1717_v48, 16  ;;  %vm633_vm14 = vcmp.eq.s32.totalorder %v3159_v2, 0 }
  0xad   :  { %vm1419_vm15 = vcmp.lt.s32.totalorder %v3162_v41, 0  ;;  %v1720_v20 = vshrl.u32 %v3164_v12, 16  ;;  %v1721_v60 = vand.u32 65535, %v1717_v48  ;;  %v3194_v10 = vsel %vm162_vm7, nan, %v171_v54 }
  0xae   :  { %v3197_v18 = vsel %vm162_vm7, nan, %v326_v16  ;;  %v482_v1 = vxor.u32 2147483648, %v466_v52  ;;  %vm636_vm0 = vcmp.eq.s32.totalorder %v3159_v2, 2  ;;  %v479_v47 = vxor.u32 2147483648, %v474_v53 }
  0xaf   :  { %v3213_v42 = vsel %vm3129_vm10, %v3208_v3, %v779_v40  ;;  %v1088_v13 = vshll.u32 %v3027_v31, %v3133_v36  ;;  %v1744_v38 = vshrl.u32 %v1713_v32, 16  ;;  %v1089_v9 = vshrl.u32 %v1071_v55, %v1087_v0 }
  0xb0   :  { %v1093_v7 = vshll.u32 %v1092_v29, 23  ;;  %v1421_v25 = vsel %vm1419_vm15, %v1420_v34, %v3162_v41  ;;  %v1724_v8 = vmul.u32 %v1722_v33, %v1719_v4  ;;  %v328_v28 = vsub.f32 0.0, %v3197_v18 }
  0xb1   :  { %v780_v35 = vsub.s32 4, %v2881_v27  ;;  %v3220_v61 = vmul.u32 %v1721_v60, %v1720_v20  ;;  %v2004_v63 = vand.u32 2139095040, %v3203_v37  ;;  %v483_v5 = vsel %vm481_vm13, %v482_v1, %v474_v53 }
  0xb2   :  { %v3227_v31 = vmul.f32 %v3213_v42, %v3213_v42  ;;  %v1723_v36 = vmul.u32 %v1721_v60, %v1719_v4  ;;  %v1743_v59 = vand.u32 65535, %v1713_v32  ;;  %v480_v56 = vsel %vm478_vm12, %v466_v52, %v479_v47 }
  0xb3   :  { %v638_v48 = vsel %vm636_vm0, %v482_v1, %v474_v53  ;;  %v1422_v54 = vclz %v1421_v25  ;;  %v1746_v16 = vmul.u32 %v1744_v38, %v1719_v4  ;;  %vm477_vm1 = vcmp.lt.s32.totalorder %v3078_v45, 2 }
  0xb4   :  { %v1090_v40 = vor.u32 %v1089_v9, %v1088_v13  ;;  %v1094_v55 = vor.u32 4788187, %v1093_v7  ;;  %v1726_v0 = vmul.u32 %v1722_v33, %v1720_v20  ;;  %v1727_v29 = vshll.u32 %v1724_v8, 16  ;;  %v2428_v7 = vld [vmem:[%s3765_s0 + $0x8] sm:$0xff] }
  0xb5   :  { %vm632_vm2 = vcmp.lt.s32.totalorder %v3159_v2, 2  ;;  %v635_v34 = vsel %vm633_vm14, %v466_v52, %v479_v47  ;;  %v785_v32 = vmul.f32 -0.001358992, %v3227_v31  ;;  %v1729_v60 = vshll.u32 %v3220_v61, 16 }
  0xb6   :  { %v2005_v21 = vshrl.u32 %v2004_v63, 23  ;;  %v792_v53 = vmul.f32 -0.00019511016, %v3227_v31  ;;  %vm1731_vm3 = vc.u32 %v1723_v36, %v1727_v29  ;;  %v1733_v1 = vadd.s32 %v1727_v29, %v1723_v36 }
  0xb7   :  { %v1745_v25 = vmul.u32 %v1743_v59, %v1719_v4  ;;  %v2398_v22 = vadd.s32 4294967294, %v1422_v54  ;;  %v1732_v13 = vsel %vm1731_vm3, 1, %v2439_v26  ;;  %v1747_v33 = vmul.u32 %v1743_v59, %v1720_v20 }
  0xb8   :  { %v1749_v9 = vshll.u32 %v1746_v16, 16  ;;  %vm475_vm6 = vweird.f32 %v2428_v7  ;;  %v1095_v52 = vand.u32 2147483647, %v1094_v55  ;;  %v1097_v47 = vcvt.s32.f32 %v1090_v40 }
  0xb9   :  { %v1734_v19 = vadd.s32 %v1732_v13, %v1726_v0  ;;  %v1748_v17 = vmul.u32 %v1744_v38, %v1720_v20  ;;  %v1728_v63 = vshrl.u32 %v1724_v8, 16  ;;  %vm1735_vm7 = vc.u32 %v1733_v1, %v1729_v60 }
  0xba   :  { %v1751_v30 = vshll.u32 %v1747_v33, 16  ;;  %v2411_v24 = vadd.s32 4294967169, %v2005_v21  ;;  %v1686_v4 = vshrl.u32 %v2433_v15, %v3066_v43  ;;  %v1707_v36 = vsel %vm1705_vm5, %v3115_v51, 2102212464 }
  0xbb   :  { %v1736_v59 = vsel %vm1735_vm7, 1, %v2439_v26  ;;  %vm1753_vm12 = vc.u32 %v1745_v25, %v1749_v9  ;;  %vm2399_vm13 = vcmp.lt.s32.totalorder %v2398_v22, 0  ;;  %v1755_v55 = vadd.s32 %v1749_v9, %v1745_v25 }
  0xbc   :  { %v1738_v54 = vadd.s32 %v1736_v59, %v1734_v19  ;;  %v1754_v40 = vsel %vm1753_vm12, 1, %v2439_v26  ;;  %v793_v20 = vadd.f32 0.008332121, %v792_v53  ;;  %v1098_v38 = vmul.f32 %v1097_v47, %v1095_v52 }
  0xbd   :  { %v1730_v8 = vshrl.u32 %v3220_v61, 16  ;;  %v1756_v21 = vadd.s32 %v1754_v40, %v1748_v17  ;;  %v1750_v29 = vshrl.u32 %v1746_v16, 16  ;;  %vm1757_vm14 = vc.u32 %v1755_v55, %v1751_v30 }
  0xbe   :  { %v1739_v0 = vadd.s32 %v1738_v54, %v1728_v63  ;;  %v2011_v43 = vadd.s32 1, %v2411_v24  ;;  %v3252_v60 = vsel %vm2399_vm13, 0, %v2398_v22  ;;  %v1706_v51 = vsel %vm1702_vm8, %v1686_v4, %v3140_v14 }
  0xbf   :  { %v1708_v19 = vsel %vm1704_vm9, %v3113_v58, %v1707_v36  ;;  %v1758_v53 = vsel %vm1757_vm14, 1, %v2439_v26  ;;  %v484_v61 = vsel %vm477_vm1, %v480_v56, %v483_v5  ;;  %v786_v17 = vadd.f32 0.041655596, %v785_v32 }
  0xc0   :  { %v1752_v1 = vshrl.u32 %v1747_v33, 16  ;;  %v1760_v16 = vadd.s32 %v1758_v53, %v1756_v21  ;;  %v639_v22 = vsel %vm632_vm2, %v635_v34, %v638_v48  ;;  %v1099_v24 = vxor.u32 2147483648, %v1098_v38 }
  0xc1   :  { %v3265_v25 = vadd.s32 %v1739_v0, %v1730_v8  ;;  %v3267_v13 = vadd.s32 %v1755_v55, %v1751_v30  ;;  %v1430_v14 = vsub.s32 4294967266, %v3252_v60  ;;  %v1709_v58 = vsel %vm1703_vm11, %v1706_v51, %v1708_v19 }
  0xc2   :  { %v1761_v9 = vadd.s32 %v1760_v16, %v1750_v29  ;;  %vm2012_vm5 = vcmp.gt.s32.totalorder %v2011_v43, 0  ;;  %v781_v45 = vsel %vm658_vm4, %v780_v35, %v2881_v27  ;;  %v794_v2 = vmul.f32 %v793_v20, %v3227_v31 }
  0xc3   :  { %v3786_v5 = vand.u32 2147483647, %v2719_v11  ;;  %vm979_vm9 = vcmp.lt.s32.totalorder %v3287_v50, 0  ;;  %v485_v56 = vsel %vm475_vm6, nan, %v484_v61  ;;  %v640_v49 = vsel %vm475_vm6, nan, %v639_v22 }
  0xc4   :  { %v787_v27 = vmul.f32 %v786_v17, %v3227_v31  ;;  %v1762_v35 = vadd.s32 %v1761_v9, %v1752_v1  ;;  %v1410_v11 = vadd.s32 %v3040_v57, %v3042_v44  ;;  %v1763_v48 = vmul.u32 %v3164_v12, %v1709_v58 }
  0xc5   :  { %vm3280_vm8 = vcmp.le.f32.partialorder %v3786_v5, 0.7853982  ;;  %vm1765_vm4 = vc.u32 %v3265_v25, %v3267_v13  ;;  %v2013_v34 = vsel %vm2012_vm5, %v2011_v43, 0  ;;  %v1100_v32 = vsel %vm979_vm9, %v1099_v24, %v1098_v38 }
  0xc6   :  { %v1426_v33 = vsub.s32 32, %v3252_v60  ;;  %v1431_v52 = vadd.s32 127, %v1430_v14  ;;  %v1766_v7 = vadd.s32 1, %v1762_v35  ;;  %v641_v47 = vsub.f32 0.0, %v640_v49 }
  0xc7   :  { %v783_v63 = vsel %vm3129_vm10, 0, %v781_v45  ;;  %v795_v4 = vadd.f32 -0.16666654, %v794_v2  ;;  %v3304_v57 = vmul.f32 %v485_v56, %v3194_v10  ;;  %v643_v44 = vmul.f32 %v640_v49, %v328_v28 }
  0xc8   :  { %v1767_v12 = vsel %vm1765_vm4, %v1766_v7, %v1762_v35  ;;  %v2015_v36 = vand.u32 31, %v2013_v34  ;;  %v646_v59 = vmul.f32 %v485_v56, %v328_v28  ;;  %v648_v54 = vmul.f32 %v485_v56, %v3197_v18 }
  0xc9   :  { %v3314_v40 = vsel %vm3280_vm8, %v3287_v50, %v1100_v32  ;;  %v1768_v62 = vadd.s32 %v1767_v12, %v1763_v48  ;;  %v788_v55 = vadd.f32 -0.4999988, %v787_v27  ;;  %v1427_v20 = vshll.u32 %v3162_v41, %v3252_v60 }
  0xca   :  { %v1428_v38 = vshrl.u32 %v1410_v11, %v1426_v33  ;;  %v1432_v8 = vshll.u32 %v1431_v52, 23  ;;  %v645_v21 = vmul.f32 %v641_v47, %v3194_v10  ;;  %v649_v0 = vmul.f32 %v640_v49, %v3194_v10 }
  0xcb   :  { %v796_v28 = vmul.f32 %v795_v4, %v3227_v31  ;;  %v1769_v29 = vadd.s32 536870912, %v1768_v62  ;;  %v12_v43 = vlaneseq  ;;  %v3322_v51 = vadd.f32 %v643_v44, %v3304_v57 }
  0xcc   :  { %v3326_v19 = vmul.f32 %v3314_v40, %v3314_v40  ;;  %v3328_v53 = vsub.s32 32, %v2015_v36  ;;  %v3331_v41 = vmul.f32 %v641_v47, %v3197_v18  ;;  %v3333_v60 = vand.u32 3, %v783_v63 }
  0xcd   :  { %v954_v61 = vadd.s32 3, %v783_v63  ;;  %v3335_v10 = vshrl.u32 %v1769_v29, 30  ;;  %v789_v17 = vmul.f32 %v788_v55, %v3227_v31  ;;  %v1429_v16 = vor.u32 %v1428_v38, %v1427_v20 }
  0xce   :  { %v1106_v1 = vmul.f32 -0.001358992, %v3326_v19  ;;  %v1433_v22 = vor.u32 4788187, %v1432_v8  ;;  %v3339_v24 = vadd.f32 %v646_v59, %v645_v21  ;;  %v3341_v14 = vadd.f32 %v649_v0, %v648_v54 }
  0xcf   :  { %v797_v58 = vadd.f32 1.0, %v796_v28  ;;  %v1771_v9 = vshll.u32 %v3335_v10, 30  ;;  %v1113_v18 = vmul.f32 -0.00019511016, %v3326_v19  ;;  %v2001_v45 = vand.u32 2147483647, %v3203_v37 }
  0xd0   :  { %v3789_v2 = vmov 920167782   ;;  %v3790_v56 = vmov 1326507024   ;;  %vm805_vm10 = vcmp.eq.s32.totalorder %v3333_v60, 2  ;;  %v3350_v49 = vand.u32 3, %v954_v61 }
  0xd1   :  { %v2030_v5 = vshll.u32 %v3789_v2, %v2015_v36  ;;  %v2031_v31 = vshrl.u32 %v3790_v56, %v3328_v53  ;;  %v3352_v27 = vsub.s32 %v1768_v62, %v1771_v9  ;;  %v3354_v35 = vshrl.u32 %v2013_v34, 5 }
  0xd2   :  { %v3356_v11 = vadd.f32 1.0, %v789_v17  ;;  %v1107_v48 = vadd.f32 0.041655596, %v1106_v1  ;;  %v1434_v32 = vand.u32 2147483647, %v1433_v22  ;;  %v1436_v33 = vcvt.s32.f32 %v1429_v16 }
  0xd3   :  { %v3791_v52 = vmov 2475754826   ;;  %v3792_v47 = vmov 2131351028   ;;  %v3793_v44 = vmov 2102212464   ;;  %v3365_v59 = vmul.f32 %v797_v58, %v3213_v42 }
  0xd4   :  { %v2021_v7 = vshll.u32 %v3791_v52, %v2015_v36  ;;  %v2022_v63 = vshrl.u32 %v3792_v47, %v3328_v53  ;;  %v2024_v4 = vshll.u32 %v3792_v47, %v2015_v36  ;;  %v2025_v12 = vshrl.u32 %v3793_v44, %v3328_v53 }
  0xd5   :  { %v1114_v34 = vadd.f32 0.008332121, %v1113_v18  ;;  %v2008_v54 = vand.u32 8388607, %v2001_v45  ;;  %v2032_v62 = vor.u32 %v2031_v31, %v2030_v5  ;;  %v1774_v55 = vsub.s32 0, %v3352_v27 }
  0xd6   :  { %v2027_v20 = vshll.u32 %v3793_v44, %v2015_v36  ;;  %v2028_v38 = vshrl.u32 %v3789_v2, %v3328_v53  ;;  %vm2036_vm11 = vcmp.lt.s32.totalorder %v3354_v35, 4  ;;  %v806_v8 = vxor.u32 2147483648, %v3356_v11 }
  0xd7   :  { %v1101_v21 = vsub.s32 4, %v3011_v39  ;;  %v1108_v42 = vmul.f32 %v1107_v48, %v3326_v19  ;;  %vm1773_vm15 = vcmp.lt.s32.totalorder %v3352_v27, 0  ;;  %v1437_v0 = vmul.f32 %v1436_v33, %v1434_v32 }
  0xd8   :  { %v3378_v28 = vor.u32 %v2022_v63, %v2021_v7  ;;  %v3380_v29 = vor.u32 %v2025_v12, %v2024_v4  ;;  %vm2033_vm0 = vcmp.lt.s32.totalorder %v3354_v35, 1  ;;  %vm802_vm1 = vcmp.eq.s32.totalorder %v3333_v60, 0 }
  0xd9   :  { %v2018_v61 = vshll.u32 %v2433_v15, %v2015_v36  ;;  %v2019_v17 = vshrl.u32 %v3791_v52, %v3328_v53  ;;  %vm2035_vm2 = vcmp.lt.s32.totalorder %v3354_v35, 3  ;;  %v2046_v1 = vsel %vm2036_vm11, %v2032_v62, 1326507024 }
  0xda   :  { %v1115_v16 = vmul.f32 %v1114_v34, %v3326_v19  ;;  %v1775_v22 = vsel %vm1773_vm15, %v1774_v55, %v3352_v27  ;;  %v2009_v58 = vor.u32 8388608, %v2008_v54  ;;  %v2029_v9 = vor.u32 %v2028_v38, %v2027_v20 }
  0xdb   :  { %v803_v18 = vxor.u32 2147483648, %v3365_v59  ;;  %vm960_vm3 = vcmp.eq.s32.totalorder %v3350_v49, 2  ;;  %v1102_v36 = vsel %vm979_vm9, %v1101_v21, %v3011_v39  ;;  %v1109_v2 = vadd.f32 -0.4999988, %v1108_v42  ;;  %v3412_v39 = vld [vmem:[%s3765_s0 + $0x20] sm:$0xff] }
  0xdc   :  { %v1438_v5 = vxor.u32 2147483648, %v1437_v0  ;;  %vm2034_vm6 = vcmp.lt.s32.totalorder %v3354_v35, 2  ;;  %v2045_v56 = vsel %vm2033_vm0, %v3378_v28, %v3380_v29  ;;  %v2047_v31 = vsel %vm2035_vm2, %v2029_v9, %v2046_v1 }
  0xdd   :  { %v3407_v48 = vsel %vm805_vm10, %v806_v8, %v3365_v59  ;;  %vm1318_vm7 = vcmp.lt.s32.totalorder %v3412_v39, 0  ;;  %v1776_v32 = vclz %v1775_v22  ;;  %v3415_v33 = vor.u32 %v2019_v17, %v2018_v61 }
  0xde   :  { %v3418_v52 = vsel %vm960_vm3, %v806_v8, %v3365_v59  ;;  %v1116_v7 = vadd.f32 -0.16666654, %v1115_v16  ;;  %v2042_v47 = vsel %vm2036_vm11, %v2029_v9, 920167782  ;;  %v3422_v63 = vshll.u32 %v2009_v58, 8 }
  0xdf   :  { %v1104_v4 = vsel %vm3280_vm8, 0, %v1102_v36  ;;  %v3794_v44 = vand.u32 2147483647, %v2801_v23  ;;  %v2405_v34 = vadd.s32 4294967294, %v1776_v32  ;;  %v2048_v54 = vsel %vm2034_vm6, %v2045_v56, %v2047_v31 }
  0xe0   :  { %v1110_v62 = vmul.f32 %v1109_v2, %v3326_v19  ;;  %v1439_v55 = vsel %vm1318_vm7, %v1438_v5, %v1437_v0  ;;  %v2051_v20 = vshrl.u32 %v3422_v63, 16  ;;  %v2052_v38 = vand.u32 65535, %v2048_v54 }
  0xe1   :  { %vm3428_vm12 = vcmp.le.f32.partialorder %v3794_v44, 0.7853982  ;;  %v1764_v30 = vadd.s32 %v3267_v13, %v3265_v25  ;;  %vm2406_vm13 = vcmp.lt.s32.totalorder %v2405_v34, 0  ;;  %v2041_v23 = vsel %vm2033_vm0, %v3415_v33, %v3378_v28 }
  0xe2   :  { %v2043_v8 = vsel %vm2035_vm2, %v3380_v29, %v2042_v47  ;;  %v1117_v21 = vmul.f32 %v1116_v7, %v3326_v19  ;;  %v1779_v42 = vsel %vm2406_vm13, 0, %v2405_v34  ;;  %v2050_v0 = vand.u32 65535, %v3422_v63 }
  0xe3   :  { %v2053_v61 = vshrl.u32 %v2048_v54, 16  ;;  %v3452_v25 = vsel %vm3428_vm12, %v3412_v39, %v1439_v55  ;;  %v1780_v13 = vsub.s32 32, %v1779_v42  ;;  %v1781_v17 = vshll.u32 %v3352_v27, %v1779_v42 }
  0xe4   :  { %v1784_v1 = vsub.s32 4294967266, %v1779_v42  ;;  %v3460_v16 = vsel %vm802_vm1, %v3356_v11, %v803_v18  ;;  %v3462_v19 = vadd.s32 3, %v1104_v4  ;;  %v2044_v22 = vsel %vm2034_vm6, %v2041_v23, %v2043_v8 }
  0xe5   :  { %v2056_v58 = vmul.u32 %v2052_v38, %v2051_v20  ;;  %v3466_v9 = vadd.f32 1.0, %v1110_v62  ;;  %v3468_v36 = vand.u32 3, %v1104_v4  ;;  %v1782_v2 = vshrl.u32 %v1764_v30, %v1780_v13 }
  0xe6   :  { %v1785_v27 = vadd.s32 127, %v1784_v1  ;;  %v1118_v5 = vadd.f32 1.0, %v1117_v21  ;;  %v3472_v56 = vmul.f32 %v3452_v25, %v3452_v25  ;;  %v2054_v31 = vmul.u32 %v2052_v38, %v2050_v0 }
  0xe7   :  { %v2055_v32 = vmul.u32 %v2053_v61, %v2050_v0  ;;  %v1783_v7 = vor.u32 %v1782_v2, %v1781_v17  ;;  %v2074_v44 = vand.u32 65535, %v2044_v22  ;;  %v2075_v34 = vshrl.u32 %v2044_v22, 16 }
  0xe8   :  { %v1786_v47 = vshll.u32 %v1785_v27, 23  ;;  %vm957_vm14 = vcmp.eq.s32.totalorder %v3350_v49, 0  ;;  %v2017_v54 = vshrl.u32 %v2433_v15, %v3328_v53  ;;  %v2057_v4 = vmul.u32 %v2053_v61, %v2051_v20 }
  0xe9   :  { %v2058_v62 = vshll.u32 %v2055_v32, 16  ;;  %v2060_v55 = vshll.u32 %v2056_v58, 16  ;;  %v1790_v23 = vcvt.s32.f32 %v1783_v7  ;;  %v2076_v8 = vmul.u32 %v2074_v44, %v2050_v0 }
  0xea   :  { %v1787_v30 = vor.u32 4788187, %v1786_v47  ;;  %v2077_v21 = vmul.u32 %v2075_v34, %v2050_v0  ;;  %v2038_v38 = vsel %vm2036_vm11, %v3380_v29, 2102212464  ;;  %v2078_v13 = vmul.u32 %v2074_v44, %v2051_v20 }
  0xeb   :  { %vm2062_vm5 = vc.u32 %v2054_v31, %v2058_v62  ;;  %v2064_v42 = vadd.s32 %v2058_v62, %v2054_v31  ;;  %vm801_vm8 = vcmp.lt.s32.totalorder %v3333_v60, 2  ;;  %v2079_v15 = vmul.u32 %v2075_v34, %v2051_v20 }
  0xec   :  { %v1788_v17 = vand.u32 2147483647, %v1787_v30  ;;  %v2063_v1 = vsel %vm2062_vm5, 1, %v2439_v26  ;;  %v2080_v53 = vshll.u32 %v2077_v21, 16  ;;  %vm956_vm9 = vcmp.lt.s32.totalorder %v3350_v49, 2 }
  0xed   :  { %v2059_v61 = vshrl.u32 %v2055_v32, 16  ;;  %v2065_v22 = vadd.s32 %v2063_v1, %v2057_v4  ;;  %vm2066_vm4 = vc.u32 %v2064_v42, %v2060_v55  ;;  %v2082_v0 = vshll.u32 %v2078_v13, 16 }
  0xee   :  { %v1791_v2 = vmul.f32 %v1790_v23, %v1788_v17  ;;  %v2067_v27 = vsel %vm2066_vm4, 1, %v2439_v26  ;;  %vm2084_vm10 = vc.u32 %v2076_v8, %v2080_v53  ;;  %v2086_v29 = vadd.s32 %v2080_v53, %v2076_v8 }
  0xef   :  { %v1452_v31 = vmul.f32 -0.00019511016, %v3472_v56  ;;  %v2061_v7 = vshrl.u32 %v2056_v58, 16  ;;  %v2069_v47 = vadd.s32 %v2067_v27, %v2065_v22  ;;  %v2085_v44 = vsel %vm2084_vm10, 1, %v2439_v26 }
  0xf0   :  { %v1119_v20 = vmul.f32 %v1118_v5, %v3314_v40  ;;  %v2081_v34 = vshrl.u32 %v2077_v21, 16  ;;  %v2087_v62 = vadd.s32 %v2085_v44, %v2079_v15  ;;  %vm2088_vm11 = vc.u32 %v2086_v29, %v2082_v0 }
  0xf1   :  { %v2037_v32 = vsel %vm2033_vm0, %v2017_v54, %v3415_v33  ;;  %v2039_v4 = vsel %vm2035_vm2, %v3378_v28, %v2038_v38  ;;  %v2070_v55 = vadd.s32 %v2069_v47, %v2059_v61  ;;  %v2089_v30 = vsel %vm2088_vm11, 1, %v2439_v26 }
  0xf2   :  { %vm799_vm15 = vweird.f32 %v3208_v3  ;;  %v1445_v58 = vmul.f32 -0.001358992, %v3472_v56  ;;  %v1792_v23 = vxor.u32 2147483648, %v1791_v2  ;;  %v2083_v40 = vshrl.u32 %v2078_v13, 16 }
  0xf3   :  { %v2091_v5 = vadd.s32 %v2089_v30, %v2087_v62  ;;  %v1453_v8 = vadd.f32 0.008332121, %v1452_v31  ;;  %vm1672_vm1 = vcmp.lt.s32.totalorder %v2996_v46, 0  ;;  %v3497_v21 = vadd.s32 %v2070_v55, %v2061_v7 }
  0xf4   :  { %v3499_v33 = vadd.s32 %v2086_v29, %v2082_v0  ;;  %v959_v26 = vsel %vm957_vm14, %v3356_v11, %v803_v18  ;;  %v1276_v28 = vand.u32 3, %v3462_v19  ;;  %v2040_v54 = vsel %vm2034_vm6, %v2037_v32, %v2039_v4 }
  0xf5   :  { %v2092_v38 = vadd.s32 %v2091_v5, %v2081_v34  ;;  %vm1123_vm0 = vcmp.eq.s32.totalorder %v3468_v36, 0  ;;  %v1124_v42 = vxor.u32 2147483648, %v1119_v20  ;;  %vm1126_vm2 = vcmp.eq.s32.totalorder %v3468_v36, 2 }
  0xf6   :  { %v1127_v13 = vxor.u32 2147483648, %v3466_v9  ;;  %v1446_v17 = vadd.f32 0.041655596, %v1445_v58  ;;  %v3797_v59 = vand.u32 2147483647, %v2996_v46  ;;  %v1793_v11 = vsel %vm1672_vm1, %v1792_v23, %v1791_v2 }
  0xf7   :  { %v2093_v35 = vadd.s32 %v2092_v38, %v2083_v40  ;;  %v808_v18 = vsel %vm801_vm8, %v3460_v16, %v3407_v48  ;;  %v1454_v19 = vmul.f32 %v1453_v8, %v3472_v56  ;;  %v2094_v15 = vmul.u32 %v3422_v63, %v2040_v54 }
  0xf8   :  { %vm3514_vm3 = vcmp.le.f32.partialorder %v3797_v59, 0.7853982  ;;  %vm2096_vm6 = vc.u32 %v3497_v21, %v3499_v33  ;;  %v963_v53 = vsel %vm956_vm9, %v959_v26, %v3418_v52  ;;  %vm1278_vm13 = vcmp.eq.s32.totalorder %v1276_v28, 0 }
  0xf9   :  { %vm1281_vm14 = vcmp.eq.s32.totalorder %v1276_v28, 2  ;;  %v2097_v61 = vadd.s32 1, %v2093_v35  ;;  %vm1122_vm5 = vcmp.lt.s32.totalorder %v3468_v36, 2  ;;  %v1125_v60 = vsel %vm1123_vm0, %v3466_v9, %v1124_v42 }
  0xfa   :  { %v1128_v48 = vsel %vm1126_vm2, %v1127_v13, %v1119_v20  ;;  %v3540_v63 = vsel %vm3514_vm3, %v2996_v46, %v1793_v11  ;;  %vm1277_vm8 = vcmp.lt.s32.totalorder %v1276_v28, 2  ;;  %v1440_v49 = vsub.s32 4, %v3103_v6 }
  0xfb   :  { %v1447_v52 = vmul.f32 %v1446_v17, %v3472_v56  ;;  %v2098_v16 = vsel %vm2096_vm6, %v2097_v61, %v2093_v35  ;;  %v1280_v22 = vsel %vm1278_vm13, %v3466_v9, %v1124_v42  ;;  %v1283_v0 = vsel %vm1281_vm14, %v1127_v13, %v1119_v20 }
  0xfc   :  { %v1455_v2 = vadd.f32 -0.16666654, %v1454_v19  ;;  %v2099_v27 = vadd.s32 %v2098_v16, %v2094_v15  ;;  %v3547_v36 = vadd.f32 %v3331_v41, %v3304_v57  ;;  %vm1120_vm9 = vweird.f32 %v3287_v50 }
  0xfd   :  { %v1129_v29 = vsel %vm1122_vm5, %v1125_v60, %v1128_v48  ;;  %v3552_v31 = vmul.f32 %v3540_v63, %v3540_v63  ;;  %v809_v7 = vsel %vm799_vm15, nan, %v808_v18  ;;  %v964_v9 = vsel %vm799_vm15, nan, %v963_v53 }
  0xfe   :  { %v3559_v47 = vmul.f32 0.316, %v3339_v24  ;;  %v2100_v44 = vadd.s32 536870912, %v2099_v27  ;;  %v965_v20 = vsub.f32 0.0, %v809_v7  ;;  %v3562_v57 = vmul.f32 0.316, %v3547_v36 }
  0xff   :  { %v1284_v41 = vsel %vm1277_vm8, %v1280_v22, %v1283_v0  ;;  %v1448_v34 = vadd.f32 -0.4999988, %v1447_v52  ;;  %v1130_v62 = vsel %vm1120_vm9, nan, %v1129_v29  ;;  %v1441_v32 = vsel %vm1318_vm7, %v1440_v49, %v3103_v6 }
 0x100   :  { %v1456_v3 = vmul.f32 %v1455_v2, %v3472_v56  ;;  %v3571_v4 = vshrl.u32 %v2100_v44, 30  ;;  %v966_v55 = vmul.f32 %v809_v7, %v3322_v51  ;;  %v3575_v30 = vmul.f32 %v964_v9, %v3322_v51 }
 0x101   :  { %v968_v58 = vmul.f32 %v809_v7, %v3341_v14  ;;  %v1806_v23 = vmul.f32 -0.00019511016, %v3552_v31  ;;  %v3580_v40 = vmul.f32 %v964_v9, %v3341_v14  ;;  %v3582_v5 = vsub.f32 0.0, %v964_v9 }
 0x102   :  { %v1285_v6 = vsel %vm1120_vm9, nan, %v1284_v41  ;;  %v2102_v8 = vshll.u32 %v3571_v4, 30  ;;  %v3587_v26 = vsub.f32 0.0, %v965_v20  ;;  %v1286_v28 = vsub.f32 0.0, %v1130_v62 }
 0x103   :  { %v1443_v51 = vsel %vm3428_vm12, 0, %v1441_v32  ;;  %v1449_v54 = vmul.f32 %v1448_v34, %v3472_v56  ;;  %v3592_v38 = vmul.f32 0.0825, %v1130_v62  ;;  %v1457_v42 = vadd.f32 1.0, %v1456_v3 }
 0x104   :  { %v1799_v14 = vmul.f32 -0.001358992, %v3552_v31  ;;  %v3595_v13 = vsub.s32 %v2099_v27, %v2102_v8  ;;  %v1289_v17 = vmul.f32 %v1130_v62, %v966_v55  ;;  %v1290_v50 = vmul.f32 %v1285_v6, %v3339_v24 }
 0x105   :  { %v1295_v59 = vmul.f32 %v1130_v62, %v968_v58  ;;  %v1807_v11 = vadd.f32 0.008332121, %v1806_v23  ;;  %v1296_v35 = vmul.f32 %v1285_v6, %v3547_v36  ;;  %v1614_v18 = vadd.s32 3, %v1443_v51 }
 0x106   :  { %vm2104_vm7 = vcmp.lt.s32.totalorder %v3595_v13, 0  ;;  %v2105_v12 = vsub.s32 0, %v3595_v13  ;;  %v1288_v56 = vmul.f32 0.0825, %v1285_v6  ;;  %v1292_v19 = vmul.f32 %v1285_v6, %v966_v55 }
 0x107   :  { %v1293_v15 = vmul.f32 %v1286_v28, %v3339_v24  ;;  %v1450_v53 = vadd.f32 1.0, %v1449_v54  ;;  %v1458_v61 = vmul.f32 %v1457_v42, %v3452_v25  ;;  %v1460_v60 = vand.u32 3, %v1443_v51 }
 0x108   :  { %v1800_v48 = vadd.f32 0.041655596, %v1799_v14  ;;  %v2106_v49 = vsel %vm2104_vm7, %v2105_v12, %v3595_v13  ;;  %v1298_v52 = vmul.f32 %v1285_v6, %v968_v58  ;;  %v1299_v16 = vmul.f32 %v1286_v28, %v3547_v36 }
 0x109   :  { %v1808_v22 = vmul.f32 %v1807_v11, %v3552_v31  ;;  %v2107_v0 = vclz %v2106_v49  ;;  %v3606_v2 = vadd.f32 %v1290_v50, %v1289_v17  ;;  %v3608_v27 = vadd.f32 %v1296_v35, %v1295_v59 }
 0x10a   :  { %v3611_v29 = vmul.f32 %v1130_v62, %v3582_v5  ;;  %v1615_v7 = vand.u32 3, %v1614_v18  ;;  %v3613_v9 = vadd.f32 %v1293_v15, %v1292_v19  ;;  %v3616_v25 = vmul.f32 %v1285_v6, %v3582_v5 }
 0x10b   :  { %v1303_v44 = vmul.f32 %v3592_v38, %v966_v55  ;;  %v1466_v20 = vxor.u32 2147483648, %v1450_v53  ;;  %v1463_v41 = vxor.u32 2147483648, %v1458_v61  ;;  %vm1465_vm12 = vcmp.eq.s32.totalorder %v1460_v60, 2 }
 0x10c   :  { %v1794_v34 = vsub.s32 4, %v3335_v10  ;;  %v1801_v32 = vmul.f32 %v1800_v48, %v3552_v31  ;;  %v1304_v3 = vmul.f32 %v1288_v56, %v3339_v24  ;;  %vm1462_vm4 = vcmp.eq.s32.totalorder %v1460_v60, 0 }
 0x10d   :  { %v1809_v62 = vadd.f32 -0.16666654, %v1808_v22  ;;  %v2412_v23 = vadd.s32 4294967294, %v2107_v0  ;;  %v1307_v8 = vmul.f32 %v3592_v38, %v968_v58  ;;  %v1308_v28 = vmul.f32 %v1288_v56, %v3547_v36 }
 0x10e   :  { %vm1461_vm10 = vcmp.lt.s32.totalorder %v1460_v60, 2  ;;  %vm1617_vm11 = vcmp.eq.s32.totalorder %v1615_v7, 0  ;;  %v1467_v6 = vsel %vm1465_vm12, %v1466_v20, %v1458_v61  ;;  %vm1620_vm15 = vcmp.eq.s32.totalorder %v1615_v7, 2 }
 0x10f   :  { %v2095_v55 = vadd.s32 %v3499_v33, %v3497_v21  ;;  %vm2413_vm0 = vcmp.lt.s32.totalorder %v2412_v23, 0  ;;  %v1464_v51 = vsel %vm1462_vm4, %v1450_v53, %v1463_v41  ;;  %v1795_v24 = vsel %vm1672_vm1, %v1794_v34, %v3335_v10 }
 0x110   :  { %v1802_v54 = vadd.f32 -0.4999988, %v1801_v32  ;;  %v2110_v42 = vsel %vm2413_vm0, 0, %v2412_v23  ;;  %v1810_v14 = vmul.f32 %v1809_v62, %v3552_v31  ;;  %v3631_v50 = vadd.f32 %v1299_v16, %v1298_v52 }
 0x111   :  { %v2111_v58 = vsub.s32 32, %v2110_v42  ;;  %v2112_v36 = vshll.u32 %v3595_v13, %v2110_v42  ;;  %v2115_v17 = vsub.s32 4294967266, %v2110_v42  ;;  %v1305_v59 = vadd.f32 %v1304_v3, %v1303_v44 }
 0x112   :  { %v1309_v11 = vadd.f32 %v1308_v28, %v1307_v8  ;;  %vm1616_vm2 = vcmp.lt.s32.totalorder %v1615_v7, 2  ;;  %v1619_v21 = vsel %vm1617_vm11, %v1450_v53, %v1463_v41  ;;  %v1622_v33 = vsel %vm1620_vm15, %v1466_v20, %v1458_v61 }
 0x113   :  { %v2113_v35 = vshrl.u32 %v2095_v55, %v2111_v58  ;;  %v2116_v46 = vadd.s32 127, %v2115_v17  ;;  %v3637_v10 = vmul.f32 %v3592_v38, %v3582_v5  ;;  %vm1459_vm1 = vweird.f32 %v3412_v39 }
 0x114   :  { %v1468_v13 = vsel %vm1461_vm10, %v1464_v51, %v1467_v6  ;;  %v1797_v18 = vsel %vm3514_vm3, 0, %v1795_v24  ;;  %v1803_v12 = vmul.f32 %v1802_v54, %v3552_v31  ;;  %v1811_v56 = vadd.f32 1.0, %v1810_v14 }
 0x115   :  { %v2114_v19 = vor.u32 %v2113_v35, %v2112_v36  ;;  %v2117_v15 = vshll.u32 %v2116_v46, 23  ;;  %v3645_v53 = vadd.f32 %v1305_v59, %v3559_v47  ;;  %v3648_v61 = vadd.f32 %v1309_v11, %v3562_v57 }
 0x116   :  { %v1623_v5 = vsel %vm1616_vm2, %v1619_v21, %v1622_v33  ;;  %v1631_v38 = vsub.f32 0.0, %v3613_v9  ;;  %v1638_v60 = vsub.f32 0.0, %v3631_v50  ;;  %v1968_v48 = vadd.s32 3, %v1797_v18 }
 0x117   :  { %v2118_v49 = vor.u32 4788187, %v2117_v15  ;;  %v2121_v1 = vcvt.s32.f32 %v2114_v19  ;;  %v1469_v31 = vsel %vm1459_vm1, nan, %v1468_v13  ;;  %v1645_v52 = vsub.f32 0.0, %v3616_v25 }
 0x118   :  { %v3656_v16 = vmul.f32 0.384, %v3613_v9  ;;  %v3659_v47 = vmul.f32 0.384, %v3631_v50  ;;  %v1624_v57 = vsel %vm1459_vm1, nan, %v1623_v5  ;;  %v1804_v22 = vadd.f32 1.0, %v1803_v12 }
 0x119   :  { %v1812_v0 = vmul.f32 %v1811_v56, %v3540_v63  ;;  %v2119_v7 = vand.u32 2147483647, %v2118_v49  ;;  %v1625_v44 = vsub.f32 0.0, %v1624_v57  ;;  %v3664_v20 = vmul.f32 -0.0825, %v1469_v31 }
 0x11a   :  { %v3667_v41 = vmul.f32 0.384, %v3616_v25  ;;  %v1814_v34 = vand.u32 3, %v1797_v18  ;;  %v3669_v32 = vmul.f32 -0.0825, %v1624_v57  ;;  %v1628_v3 = vmul.f32 %v1469_v31, %v3606_v2 }
 0x11b   :  { %v1969_v62 = vand.u32 3, %v1968_v48  ;;  %v2122_v23 = vmul.f32 %v2121_v1, %v2119_v7  ;;  %v1629_v39 = vmul.f32 %v1624_v57, %v3575_v30  ;;  %v1633_v8 = vmul.f32 %v1469_v31, %v3575_v30 }
 0x11c   :  { %vm2003_vm3 = vcmp.lt.s32.totalorder %v3203_v37, 0  ;;  %v2125_v63 = vsub.s32 4, %v3571_v4  ;;  %v1817_v28 = vxor.u32 2147483648, %v1812_v0  ;;  %v1820_v6 = vxor.u32 2147483648, %v1804_v22 }
 0x11d   :  { %vm3678_vm6 = vcmp.le.f32.partialorder %v2001_v45, 0.7853982  ;;  %v2123_v51 = vxor.u32 2147483648, %v2122_v23  ;;  %v1635_v24 = vmul.f32 %v1469_v31, %v3608_v27  ;;  %v1636_v54 = vmul.f32 %v1624_v57, %v3580_v40 }
 0x11e   :  { %vm1816_vm13 = vcmp.eq.s32.totalorder %v1814_v34, 0  ;;  %vm1819_vm14 = vcmp.eq.s32.totalorder %v1814_v34, 2  ;;  %v1632_v42 = vmul.f32 %v1625_v44, %v3606_v2  ;;  %v1639_v14 = vmul.f32 %v1625_v44, %v3608_v27 }
 0x11f   :  { %vm1974_vm5 = vcmp.eq.s32.totalorder %v1969_v62, 2  ;;  %v2124_v58 = vsel %vm2003_vm3, %v2123_v51, %v2122_v23  ;;  %v1640_v45 = vmul.f32 %v1469_v31, %v3580_v40  ;;  %vm1971_vm8 = vcmp.eq.s32.totalorder %v1969_v62, 0 }
 0x120   :  { %v2126_v36 = vsel %vm2003_vm3, %v2125_v63, %v3571_v4  ;;  %v2127_v17 = vsel %vm3678_vm6, %v3203_v37, %v2124_v58  ;;  %vm1815_vm9 = vcmp.lt.s32.totalorder %v1814_v34, 2  ;;  %v1818_v59 = vsel %vm1816_vm13, %v1804_v22, %v1817_v28  ;;  %v2431_v37 = vld [vmem:[%s3765_s0 + $0x28] sm:$0xff] }
 0x121   :  { %v1821_v11 = vsel %vm1819_vm14, %v1820_v6, %v1812_v0  ;;  %v2129_v21 = vmul.f32 %v2127_v17, %v2127_v17  ;;  %v1630_v33 = vadd.f32 %v1629_v39, %v1628_v3  ;;  %v1642_v35 = vmul.f32 %v1469_v31, %v3611_v29 }
 0x122   :  { %vm1970_vm7 = vcmp.lt.s32.totalorder %v1969_v62, 2  ;;  %v1976_v46 = vsel %vm1974_vm5, %v1820_v6, %v1812_v0  ;;  %v1973_v13 = vsel %vm1971_vm8, %v1804_v22, %v1817_v28  ;;  %v2128_v18 = vsel %vm3678_vm6, 0, %v2126_v36 }
 0x123   :  { %v2130_v12 = vmul.f32 -0.001358992, %v2129_v21  ;;  %v2137_v56 = vmul.f32 -0.00019511016, %v2129_v21  ;;  %v1637_v4 = vadd.f32 %v1636_v54, %v1635_v24  ;;  %v1643_v19 = vmul.f32 %v1624_v57, %v3587_v26 }
 0x124   :  { %vm1813_vm12 = vweird.f32 %v2431_v37  ;;  %v1822_v15 = vsel %vm1815_vm9, %v1818_v59, %v1821_v11  ;;  %v1646_v5 = vmul.f32 %v1625_v44, %v3611_v29  ;;  %v1647_v48 = vmul.f32 %v1469_v31, %v3587_v26 }
 0x125   :  { %v2131_v49 = vadd.f32 0.041655596, %v2130_v12  ;;  %v2138_v1 = vadd.f32 0.008332121, %v2137_v56  ;;  %v3705_v22 = vadd.f32 %v1633_v8, %v1632_v42  ;;  %v3707_v0 = vadd.f32 %v1640_v45, %v1639_v14  ;;  %v2432_v56 = vld [vmem:[%s3765_s0 + $0x30] sm:$0xff] }
 0x126   :  { %v1977_v7 = vsel %vm1970_vm7, %v1973_v13, %v1976_v46  ;;  %v2299_v57 = vadd.s32 3, %v2128_v18  ;;  %v1649_v3 = vmul.f32 %v3664_v20, %v3606_v2  ;;  %v1823_v23 = vsel %vm1813_vm12, nan, %v1822_v15 }
 0x127   :  { %v2132_v34 = vmul.f32 %v2131_v49, %v2129_v21  ;;  %v2139_v39 = vmul.f32 %v2138_v1, %v2129_v21  ;;  %v1644_v63 = vadd.f32 %v1643_v19, %v1642_v35  ;;  %v1650_v31 = vmul.f32 %v3669_v32, %v3575_v30 }
 0x128   :  { %v1655_v44 = vmul.f32 %v3664_v20, %v3608_v27  ;;  %v1656_v8 = vmul.f32 %v3669_v32, %v3580_v40  ;;  %v3719_v62 = vadd.f32 %v1647_v48, %v1646_v5  ;;  %v1978_v28 = vsel %vm1813_vm12, nan, %v1977_v7 }
 0x129   :  { %v2133_v6 = vadd.f32 -0.4999988, %v2132_v34  ;;  %v2140_v2 = vadd.f32 -0.16666654, %v2139_v39  ;;  %v1661_v55 = vmul.f32 %v3664_v20, %v3611_v29  ;;  %v1979_v51 = vsub.f32 0.0, %v1823_v23 }
 0x12a   :  { %v2145_v24 = vand.u32 3, %v2128_v18  ;;  %v2300_v54 = vand.u32 3, %v2299_v57  ;;  %v1662_v30 = vmul.f32 %v3669_v32, %v3587_v26  ;;  %v1980_v42 = vmul.f32 %v1823_v23, %v1630_v33 }
 0x12b   :  { %v2134_v27 = vmul.f32 %v2133_v6, %v2129_v21  ;;  %v2141_v14 = vmul.f32 %v2140_v2, %v2129_v21  ;;  %v1981_v40 = vmul.f32 %v1978_v28, %v1631_v38  ;;  %v1983_v58 = vmul.f32 %v1978_v28, %v1630_v33 }
 0x12c   :  { %v1986_v45 = vmul.f32 %v1823_v23, %v1637_v4  ;;  %v1987_v36 = vmul.f32 %v1978_v28, %v1638_v60  ;;  %v1989_v59 = vmul.f32 %v1978_v28, %v1637_v4  ;;  %v1992_v11 = vmul.f32 %v1823_v23, %v1644_v63 }
 0x12d   :  { %v2135_v29 = vadd.f32 1.0, %v2134_v27  ;;  %v2142_v20 = vadd.f32 1.0, %v2141_v14  ;;  %v1984_v35 = vmul.f32 %v1979_v51, %v1631_v38  ;;  %v1990_v26 = vmul.f32 %v1979_v51, %v1638_v60 }
 0x12e   :  { %vm2150_vm4 = vcmp.eq.s32.totalorder %v2145_v24, 2  ;;  %vm2305_vm10 = vcmp.eq.s32.totalorder %v2300_v54, 2  ;;  %v1993_v32 = vmul.f32 %v1978_v28, %v1645_v52  ;;  %v1995_v21 = vmul.f32 %v1978_v28, %v1644_v63 }
 0x12f   :  { %v2143_v33 = vmul.f32 %v2142_v20, %v2127_v17  ;;  %v2151_v46 = vxor.u32 2147483648, %v2135_v29  ;;  %v1996_v13 = vmul.f32 %v1979_v51, %v1645_v52  ;;  %vm2146_vm11 = vcmp.lt.s32.totalorder %v2145_v24, 2 }
 0x130   :  { %vm2147_vm15 = vcmp.eq.s32.totalorder %v2145_v24, 0  ;;  %vm2302_vm0 = vcmp.eq.s32.totalorder %v2300_v54, 0  ;;  %vm2301_vm2 = vcmp.lt.s32.totalorder %v2300_v54, 2  ;;  %v1652_v50 = vadd.f32 %v1650_v31, %v1649_v3 }
 0x131   :  { %v2148_v18 = vxor.u32 2147483648, %v2143_v33  ;;  %v2152_v9 = vsel %vm2150_vm4, %v2151_v46, %v2143_v33  ;;  %v2307_v38 = vsel %vm2305_vm10, %v2151_v46, %v2143_v33  ;;  %v1658_v60 = vadd.f32 %v1656_v8, %v1655_v44 }
 0x132   :  { %v1664_v12 = vadd.f32 %v1662_v30, %v1661_v55  ;;  %vm2144_vm1 = vweird.f32 %v2432_v56  ;;  %v1985_v17 = vadd.f32 %v1984_v35, %v1983_v58  ;;  %v1991_v4 = vadd.f32 %v1990_v26, %v1989_v59  ;;  %v2330_v58 = vld [vmem:[%s3766_s1] sm:$0xff] }
 0x133   :  { %v2149_v19 = vsel %vm2147_vm15, %v2135_v29, %v2148_v18  ;;  %v2304_v25 = vsel %vm2302_vm0, %v2135_v29, %v2148_v18  ;;  %v1982_v52 = vadd.f32 %v1981_v40, %v1980_v42  ;;  %v1988_v37 = vadd.f32 %v1987_v36, %v1986_v45  ;;  %v2418_v45 = vld [vmem:[%s3766_s1 + $0x10] sm:$0xff] }
 0x134   :  { %v2153_v15 = vsel %vm2146_vm11, %v2149_v19, %v2152_v9  ;;  %v2308_v5 = vsel %vm2301_vm2, %v2304_v25, %v2307_v38  ;;  %v1994_v48 = vadd.f32 %v1993_v32, %v1992_v11  ;;  %v1997_v49 = vadd.f32 %v1996_v13, %v1995_v21 }
 0x135   :  { %v2154_v1 = vsel %vm2144_vm1, nan, %v2153_v15  ;;  %v2309_v7 = vsel %vm2144_vm1, nan, %v2308_v5  ;;  %v1653_v57 = vadd.f32 %v1652_v50, %v3656_v16  ;;  %v1659_v3 = vadd.f32 %v1658_v60, %v3659_v47 }
 0x136   :  { %v2310_v23 = vmul.f32 0.088, %v2154_v1  ;;  %v2311_v34 = vmul.f32 0.088, %v2309_v7  ;;  %v1312_v39 = vadd.f32 0.333, %v3637_v10  ;;  %v1665_v63 = vadd.f32 %v1664_v12, %v3667_v41 }
 0x137   :  { %v2314_v31 = vmul.f32 0.107, %v1985_v17  ;;  %v2320_v44 = vmul.f32 0.107, %v1991_v4  ;;  %v13_v55 = vshrl.u32 %v12_v43, 7  ;;  %v1654_v24 = vadd.f32 %v1653_v57, %v3645_v53  ;;  %v2417_v53 = vld [vmem:[%s3766_s1 + $0x8] sm:$0xff] }
 0x138   :  { %v2312_v8 = vmul.f32 %v2310_v23, %v1982_v52  ;;  %v2313_v28 = vmul.f32 %v2311_v34, %v3705_v22  ;;  %v2318_v6 = vmul.f32 %v2310_v23, %v1988_v37  ;;  %v2319_v2 = vmul.f32 %v2311_v34, %v3707_v0 }
 0x139   :  { %v2324_v51 = vmul.f32 %v2310_v23, %v1994_v48  ;;  %v2325_v16 = vmul.f32 %v2311_v34, %v3719_v62  ;;  %v2326_v47 = vmul.f32 0.107, %v1997_v49  ;;  %v1660_v10 = vadd.f32 %v1659_v3, %v3648_v61 }
 0x13a   :  { %v2315_v54 = vadd.f32 %v2313_v28, %v2312_v8  ;;  %v2321_v41 = vadd.f32 %v2319_v2, %v2318_v6  ;;  %v1666_v30 = vadd.f32 %v1665_v63, %v1312_v39  ;;  %v14_v22 = vmul.u32 128, %v13_v55 }
 0x13b   :  { %v2327_v42 = vadd.f32 %v2325_v16, %v2324_v51  ;;  %v16_v40 = vand.u32 127, %v12_v43 }
 0x13c   :  { %v2316_v27 = vadd.f32 %v2315_v54, %v2314_v31  ;;  %v2322_v14 = vadd.f32 %v2321_v41, %v2320_v44 }
 0x13d   :  { %v2328_v0 = vadd.f32 %v2327_v42, %v2326_v47  ;;  %v17_v29 = vadd.s32 %v16_v40, %v14_v22 }
 0x13e   :  { %v2317_v62 = vadd.f32 %v2316_v27, %v1654_v24  ;;  %v2323_v61 = vadd.f32 %v2322_v14, %v1660_v10 }
 0x13f   :  { %v2329_v36 = vadd.f32 %v2328_v0, %v1666_v30  ;;  %vm2347_vm3 = vcmp.lt.s32.totalorder %v17_v29, 8 }
 0x140   :  { %v2331_v59 = vsub.f32 %v2317_v62, %v2330_v58  ;;  %v2335_v11 = vsub.f32 %v2323_v61, %v2417_v53 }
 0x141   :  { %v2340_v43 = vsub.f32 %v2329_v36, %v2418_v45 }
 0x142   :  { %v2332_v20 = vand.u32 2147483647, %v2331_v59  ;;  %v2336_v35 = vand.u32 2147483647, %v2335_v11 }
 0x143   :  { %v2341_v26 = vand.u32 2147483647, %v2340_v43 }
 0x144   :  { %v2337_v32 = vadd.f32 %v2336_v35, %v2332_v20 }
 0x146   :  { %v2342_v21 = vadd.f32 %v2341_v26, %v2337_v32 }
 0x148   :  { %v2348_v33 = vsel %vm2347_vm3, %v2342_v21, 0.0 }
 0x149   :  { %v2350_v46 = vrot.slane %v2348_v33, 4 }
 0x14b   :  { %v2351_v13 = vadd.f32 %v2350_v46, %v2348_v33 }
 0x14d   :  { %v2352_v18 = vrot.slane %v2351_v13, 2 }
 0x14f   :  { %v2353_v9 = vadd.f32 %v2352_v18, %v2351_v13 }
 0x151   :  { %v2354_v38 = vrot.slane %v2353_v9, 1 }
 0x153   :  { %v2355_v50 = vadd.f32 %v2354_v38, %v2353_v9 }
 0x155   :  { %2356 = vst [vmem:[%s3767_s2] sm:$0x1] %v2355_v50 }

</bundles_post_ra>
